<compile_context>
chip_gen: v7x
topology: tpu7x:2x2x1
jax: 0.10.0
libtpu: 0.0.40
codegen_flags: <defaults>
</compile_context>

<pallas_src>
import jax
import jax.numpy as jnp
import numpy as np
from jax.experimental import pallas as pl
from jax.experimental.pallas import tpu as pltpu

# Model hyper-parameters (small, consistent with the module).
BATCH = 2
SEQ = 8
EMB = 32
HEADS = 8
HEAD_DIM = EMB // HEADS
FF_MULT = 4
FF = FF_MULT * EMB
EPS = 1e-5  # nn.LayerNorm default


def _layer_norm(z, gamma, beta):
    # gamma, beta come in as (1, E) and broadcast over (rows, E)
    mu = jnp.mean(z, axis=-1, keepdims=True)
    var = jnp.mean((z - mu) ** 2, axis=-1, keepdims=True)
    return (z - mu) * jax.lax.rsqrt(var + EPS) * gamma + beta


def transformer_block_kernel(
    x_ref,       # (B, T, E)  f32
    wqkv_ref,    # (E, 3E)    bf16, columns = [q*scale | k | v]
    wu_ref,      # (E, E)     bf16
    vec_ref,     # (6, E)     f32, rows: bu, g1, be1, b2, g2, be2
    w1_ref,      # (E, FF)    bf16
    b1_ref,      # (1, FF)    f32
    w2_ref,      # (FF, E)    bf16
    o_ref,       # (B, T, E)  f32
):
    B, T, E = x_ref.shape
    H = HEADS
    S = E // H
    BT = B * T

    x2d = x_ref[...].reshape(BT, E)                                    # (16, 32) f32

    # --- fused Q/K/V projection: one (BT,E)@(E,3E) bf16 matmul, f32 accumulation ---
    qkv = jnp.dot(x2d.astype(jnp.bfloat16), wqkv_ref[...],
                  preferred_element_type=jnp.float32)                  # (16, 96) f32

    def to_heads(cols):
        # (BT, E) -> (B*H, T, S): expose heads as a single leading batch dim.
        return jnp.swapaxes(cols.reshape(B, T, H, S), 1, 2).reshape(B * H, T, S)

    q = to_heads(qkv[:, 0:E])          # scale already folded into weights
    k = to_heads(qkv[:, E:2 * E])
    v = to_heads(qkv[:, 2 * E:3 * E])

    # --- attention: (B*H)-batched (T,S)x(S,T) and (T,T)x(T,S); tiny, kept f32 ---
    logits = jnp.einsum('nts,nus->ntu', q, k,
                        preferred_element_type=jnp.float32)            # (BH, T, T)
    m = jnp.max(logits, axis=-1, keepdims=True)
    p = jnp.exp(logits - m)
    p = p * pl.reciprocal(jnp.sum(p, axis=-1, keepdims=True), approx=True)   # softmax (EUP recip)
    att = jnp.einsum('ntu,nus->nts', p, v,
                     preferred_element_type=jnp.float32)               # (BH, T, S)

    # re-interleave heads back onto the lane dim: (BH,T,S) -> (BT, E)  (one small relayout)
    att2d = jnp.swapaxes(att.reshape(B, H, T, S), 1, 2).reshape(BT, E)

    # --- unifyheads: single (BT,E)@(E,E) bf16 matmul + bias ---
    uni = jnp.dot(att2d.astype(jnp.bfloat16), wu_ref[...],
                  preferred_element_type=jnp.float32) + vec_ref[0:1, :]

    # residual + LayerNorm 1   (dropout p=0.0 -> identity)
    y = _layer_norm(uni + x2d, vec_ref[1:2, :], vec_ref[2:3, :])

    # --- feed-forward: Linear -> ReLU -> Linear, flattened rows, bf16 operands / f32 acc ---
    ffh = jnp.dot(y.astype(jnp.bfloat16), w1_ref[...],
                  preferred_element_type=jnp.float32) + b1_ref[...]
    ffh = jnp.maximum(ffh, 0.0)
    ffo = jnp.dot(ffh.astype(jnp.bfloat16), w2_ref[...],
                  preferred_element_type=jnp.float32) + vec_ref[3:4, :]

    # residual + LayerNorm 2
    out = _layer_norm(ffo + y, vec_ref[4:5, :], vec_ref[5:6, :])
    o_ref[...] = out.reshape(B, T, E).astype(o_ref.dtype)              # single full store


def pack_params(params):
    """One-time packing (hoisted out of the per-call path):
    fold the 1/sqrt(E) attention scale into the q columns, fuse [q|k|v] into one (E,3E) weight,
    pre-cast MXU weights to bf16, and pack the six (1,E) vectors into one (6,E) array."""
    wq, wk, wv, wu, bu, g1, be1, w1, b1, w2, b2, g2, be2 = params
    e = wq.shape[0]
    scale = jnp.float32(1.0 / (e ** 0.5))  # == (e**-0.25 on q) * (e**-0.25 on k)
    wqkv = jnp.concatenate([wq * scale, wk, wv], axis=-1).astype(jnp.bfloat16)   # (E, 3E)
    vecs = jnp.concatenate([bu, g1, be1, b2, g2, be2], axis=0)                   # (6, E) f32
    return (wqkv,
            wu.astype(jnp.bfloat16),
            vecs,
            w1.astype(jnp.bfloat16),
            b1,
            w2.astype(jnp.bfloat16))


def transformer_block(x, packed):
    wqkv, wu, vecs, w1, b1, w2 = packed
    b, t, e = x.shape
    inputs = (x, wqkv, wu, vecs, w1, b1, w2)
    in_specs = [
        pl.BlockSpec(a.shape, lambda i, n=a.ndim: (0,) * n) for a in inputs
    ]
    return pl.pallas_call(
        transformer_block_kernel,
        out_shape=jax.ShapeDtypeStruct((b, t, e), x.dtype),
        grid=(1,),  # single grid step: whole problem is a few KB, avoid per-step overhead
        in_specs=in_specs,
        out_specs=pl.BlockSpec((b, t, e), lambda i: (0, 0, 0)),
        compiler_params=pltpu.CompilerParams(
            dimension_semantics=("arbitrary",)
        ),
    )(*inputs)


def reference(x, params):
    """Pure-JAX mirror of the PyTorch forward pass (for validation)."""
    wq, wk, wv, wu, bu, g1, be1, w1, b1, w2, b2, g2, be2 = params
    b, t, e = x.shape
    h = HEADS
    s = e // h
    q = x @ wq
    k = x @ wk
    v = x @ wv
    q = q.reshape(b, t, h, s).transpose(0, 2, 1, 3) / e ** 0.25
    k = k.reshape(b, t, h, s).transpose(0, 2, 1, 3) / e ** 0.25
    v = v.reshape(b, t, h, s).transpose(0, 2, 1, 3)
    dot = jnp.einsum("bhts,bhus->bhtu", q, k)
    dot = jax.nn.softmax(dot, axis=-1)
    out = jnp.einsum("bhtu,bhus->bhts", dot, v)
    out = out.transpose(0, 2, 1, 3).reshape(b, t, e)
    att = out @ wu + bu

    def ln(z, g, bb):
        mu = z.mean(-1, keepdims=True)
        var = ((z - mu) ** 2).mean(-1, keepdims=True)
        return (z - mu) / jnp.sqrt(var + EPS) * g + bb

    y = ln(att + x, g1, be1)
    ff = jax.nn.relu(y @ w1 + b1) @ w2 + b2
    return ln(ff + y, g2, be2)


def init_params(key):
    ks = jax.random.split(key, 8)
    sd = 0.02
    wq = jax.random.normal(ks[0], (EMB, EMB), jnp.float32) * sd
    wk = jax.random.normal(ks[1], (EMB, EMB), jnp.float32) * sd
    wv = jax.random.normal(ks[2], (EMB, EMB), jnp.float32) * sd
    wu = jax.random.normal(ks[3], (EMB, EMB), jnp.float32) * sd
    bu = jax.random.normal(ks[4], (1, EMB), jnp.float32) * sd
    g1 = jnp.ones((1, EMB), jnp.float32)
    be1 = jnp.zeros((1, EMB), jnp.float32)
    w1 = jax.random.normal(ks[5], (EMB, FF), jnp.float32) * sd
    b1 = jax.random.normal(ks[6], (1, FF), jnp.float32) * sd
    w2 = jax.random.normal(ks[7], (FF, EMB), jnp.float32) * sd
    b2 = jnp.zeros((1, EMB), jnp.float32)
    g2 = jnp.ones((1, EMB), jnp.float32)
    be2 = jnp.zeros((1, EMB), jnp.float32)
    return (wq, wk, wv, wu, bu, g1, be1, w1, b1, w2, b2, g2, be2)


if __name__ == "__main__":
    key = jax.random.PRNGKey(0)
    kx, kp = jax.random.split(key)
    x = jax.random.normal(kx, (BATCH, SEQ, EMB), jnp.float32)
    params = init_params(kp)

    packed = jax.block_until_ready(pack_params(params))   # packed once, outside the call path

    out = transformer_block(x, packed)
    out = jax.block_until_ready(out)

    ref = jax.block_until_ready(reference(x, params))
    np.testing.assert_allclose(np.asarray(out), np.asarray(ref), rtol=2e-2, atol=2e-2)

    print("KERNEL_OK")
</pallas_src>

<mosaic_0001>
module attributes {stable_mosaic.version = 11 : i64} {
  func.func @transformer_block_kernel(%arg0: i32, %arg1: memref<2x8x32xf32, #tpu.memory_space<vmem>>, %arg2: memref<32x96xbf16, #tpu.memory_space<vmem>>, %arg3: memref<32x32xbf16, #tpu.memory_space<vmem>>, %arg4: memref<6x32xf32, #tpu.memory_space<vmem>>, %arg5: memref<32x128xbf16, #tpu.memory_space<vmem>>, %arg6: memref<1x128xf32, #tpu.memory_space<vmem>>, %arg7: memref<128x32xbf16, #tpu.memory_space<vmem>>, %arg8: memref<2x8x32xf32, #tpu.memory_space<vmem>>) attributes {dimension_semantics = [#tpu.dimension_semantics<arbitrary>], iteration_bounds = array<i64: 1>, scalar_prefetch = 0 : i64, scratch_operands = 0 : i64, tpu.core_type = #tpu.core_type<tc>, window_params = [{pipeline_mode = #tpu.pipeline_mode<synchronous>, transform_indices = @transform_0, window_bounds = array<i64: 2, 8, 32>}, {pipeline_mode = #tpu.pipeline_mode<synchronous>, transform_indices = @transform_1, window_bounds = array<i64: 32, 96>}, {pipeline_mode = #tpu.pipeline_mode<synchronous>, transform_indices = @transform_2, window_bounds = array<i64: 32, 32>}, {pipeline_mode = #tpu.pipeline_mode<synchronous>, transform_indices = @transform_3, window_bounds = array<i64: 6, 32>}, {pipeline_mode = #tpu.pipeline_mode<synchronous>, transform_indices = @transform_4, window_bounds = array<i64: 32, 128>}, {pipeline_mode = #tpu.pipeline_mode<synchronous>, transform_indices = @transform_5, window_bounds = array<i64: 1, 128>}, {pipeline_mode = #tpu.pipeline_mode<synchronous>, transform_indices = @transform_6, window_bounds = array<i64: 128, 32>}, {pipeline_mode = #tpu.pipeline_mode<synchronous>, transform_indices = @transform_7, window_bounds = array<i64: 2, 8, 32>}]} {
    %c0 = arith.constant 0 : index
    %c0_0 = arith.constant 0 : index
    %c0_1 = arith.constant 0 : index
    %0 = vector.load %arg1[%c0, %c0_0, %c0_1] : memref<2x8x32xf32, #tpu.memory_space<vmem>>, vector<2x8x32xf32>
    %1 = vector.shape_cast %0 : vector<2x8x32xf32> to vector<16x32xf32>
    %2 = arith.truncf %1 : vector<16x32xf32> to vector<16x32xbf16>
    %c0_2 = arith.constant 0 : index
    %c0_3 = arith.constant 0 : index
    %3 = vector.load %arg2[%c0_2, %c0_3] : memref<32x96xbf16, #tpu.memory_space<vmem>>, vector<32x96xbf16>
    %cst = arith.constant dense<0.000000e+00> : vector<16x96xf32>
    %4 = tpu.matmul %2, %3, %cst {dimension_numbers = #tpu.dot_dimension_numbers<[1], [0], [0], [1], [0, 0, 1, 1], [], []>} : vector<16x32xbf16>, vector<32x96xbf16>, vector<16x96xf32> -> vector<16x96xf32>
    %5 = vector.extract_strided_slice %4 {offsets = [0, 0], sizes = [16, 32], strides = [1, 1]} : vector<16x96xf32> to vector<16x32xf32>
    %6 = vector.shape_cast %5 : vector<16x32xf32> to vector<2x8x8x4xf32>
    %7 = tpu.transpose %6, [0, 2, 1, 3] : vector<2x8x8x4xf32> -> vector<2x8x8x4xf32>
    %8 = vector.shape_cast %7 : vector<2x8x8x4xf32> to vector<16x8x4xf32>
    %9 = vector.extract_strided_slice %4 {offsets = [0, 32], sizes = [16, 32], strides = [1, 1]} : vector<16x96xf32> to vector<16x32xf32>
    %10 = vector.shape_cast %9 : vector<16x32xf32> to vector<2x8x8x4xf32>
    %11 = tpu.transpose %10, [0, 2, 1, 3] : vector<2x8x8x4xf32> -> vector<2x8x8x4xf32>
    %12 = vector.shape_cast %11 : vector<2x8x8x4xf32> to vector<16x8x4xf32>
    %13 = vector.extract_strided_slice %4 {offsets = [0, 64], sizes = [16, 32], strides = [1, 1]} : vector<16x96xf32> to vector<16x32xf32>
    %14 = vector.shape_cast %13 : vector<16x32xf32> to vector<2x8x8x4xf32>
    %15 = tpu.transpose %14, [0, 2, 1, 3] : vector<2x8x8x4xf32> -> vector<2x8x8x4xf32>
    %16 = vector.shape_cast %15 : vector<2x8x8x4xf32> to vector<16x8x4xf32>
    "tpu.trace_start"() <{level = 10 : i32, message = "nts,nus->ntu"}> : () -> ()
    %cst_4 = arith.constant dense<0.000000e+00> : vector<16x8x8xf32>
    %17 = tpu.matmul %8, %12, %cst_4 {dimension_numbers = #tpu.dot_dimension_numbers<[2], [2], [1], [1], [0, 0, 0, 1, 1, 1], [0], [0]>} : vector<16x8x4xf32>, vector<16x8x4xf32>, vector<16x8x8xf32> -> vector<16x8x8xf32>
    "tpu.trace_stop"() : () -> ()
    %cst_5 = arith.constant dense<0xFF800000> : vector<16x8xf32>
    %18 = vector.multi_reduction <maximumf>, %17, %cst_5 [2] : vector<16x8x8xf32> to vector<16x8xf32>
    %19 = vector.shape_cast %18 : vector<16x8xf32> to vector<16x8x1xf32>
    %20 = vector.broadcast %19 : vector<16x8x1xf32> to vector<16x8x8xf32>
    %21 = arith.subf %17, %20 : vector<16x8x8xf32>
    %22 = math.exp %21 : vector<16x8x8xf32>
    %cst_6 = arith.constant dense<0.000000e+00> : vector<16x8xf32>
    %23 = vector.multi_reduction <add>, %22, %cst_6 [2] : vector<16x8x8xf32> to vector<16x8xf32>
    %24 = vector.shape_cast %23 : vector<16x8xf32> to vector<16x8x1xf32>
    %25 = tpu.reciprocal %24 {approx = true} : vector<16x8x1xf32> -> vector<16x8x1xf32>
    %26 = vector.broadcast %25 : vector<16x8x1xf32> to vector<16x8x8xf32>
    %27 = arith.mulf %22, %26 : vector<16x8x8xf32>
    "tpu.trace_start"() <{level = 10 : i32, message = "ntu,nus->nts"}> : () -> ()
    %cst_7 = arith.constant dense<0.000000e+00> : vector<16x8x4xf32>
    %28 = tpu.matmul %27, %16, %cst_7 {dimension_numbers = #tpu.dot_dimension_numbers<[2], [1], [1], [2], [0, 0, 0, 1, 1, 2], [0], [0]>} : vector<16x8x8xf32>, vector<16x8x4xf32>, vector<16x8x4xf32> -> vector<16x8x4xf32>
    "tpu.trace_stop"() : () -> ()
    %29 = vector.shape_cast %28 : vector<16x8x4xf32> to vector<2x8x8x4xf32>
    %30 = tpu.transpose %29, [0, 2, 1, 3] : vector<2x8x8x4xf32> -> vector<2x8x8x4xf32>
    %31 = vector.shape_cast %30 : vector<2x8x8x4xf32> to vector<16x32xf32>
    %32 = arith.truncf %31 : vector<16x32xf32> to vector<16x32xbf16>
    %c0_8 = arith.constant 0 : index
    %c0_9 = arith.constant 0 : index
    %33 = vector.load %arg3[%c0_8, %c0_9] : memref<32x32xbf16, #tpu.memory_space<vmem>>, vector<32x32xbf16>
    %cst_10 = arith.constant dense<0.000000e+00> : vector<16x32xf32>
    %34 = tpu.matmul %32, %33, %cst_10 {dimension_numbers = #tpu.dot_dimension_numbers<[1], [0], [0], [1], [0, 0, 1, 1], [], []>} : vector<16x32xbf16>, vector<32x32xbf16>, vector<16x32xf32> -> vector<16x32xf32>
    %c0_11 = arith.constant 0 : index
    %c0_12 = arith.constant 0 : index
    %35 = vector.load %arg4[%c0_11, %c0_12] : memref<6x32xf32, #tpu.memory_space<vmem>>, vector<1x32xf32>
    %36 = vector.broadcast %35 : vector<1x32xf32> to vector<16x32xf32>
    %37 = arith.addf %34, %36 : vector<16x32xf32>
    %38 = arith.addf %37, %1 : vector<16x32xf32>
    %c1 = arith.constant 1 : index
    %c0_13 = arith.constant 0 : index
    %39 = vector.load %arg4[%c1, %c0_13] : memref<6x32xf32, #tpu.memory_space<vmem>>, vector<1x32xf32>
    %c2 = arith.constant 2 : index
    %c0_14 = arith.constant 0 : index
    %40 = vector.load %arg4[%c2, %c0_14] : memref<6x32xf32, #tpu.memory_space<vmem>>, vector<1x32xf32>
    %cst_15 = arith.constant dense<0.000000e+00> : vector<16xf32>
    %41 = vector.multi_reduction <add>, %38, %cst_15 [1] : vector<16x32xf32> to vector<16xf32>
    %42 = vector.shape_cast %41 : vector<16xf32> to vector<16x1xf32>
    %cst_16 = arith.constant 3.200000e+01 : f32
    %43 = vector.broadcast %cst_16 : f32 to vector<16x1xf32>
    %44 = arith.divf %42, %43 : vector<16x1xf32>
    %45 = vector.broadcast %44 : vector<16x1xf32> to vector<16x32xf32>
    %46 = arith.subf %38, %45 : vector<16x32xf32>
    %47 = arith.mulf %46, %46 : vector<16x32xf32>
    %cst_17 = arith.constant dense<0.000000e+00> : vector<16xf32>
    %48 = vector.multi_reduction <add>, %47, %cst_17 [1] : vector<16x32xf32> to vector<16xf32>
    %49 = vector.shape_cast %48 : vector<16xf32> to vector<16x1xf32>
    %cst_18 = arith.constant 3.200000e+01 : f32
    %50 = vector.broadcast %cst_18 : f32 to vector<16x1xf32>
    %51 = arith.divf %49, %50 : vector<16x1xf32>
    %52 = vector.broadcast %44 : vector<16x1xf32> to vector<16x32xf32>
    %53 = arith.subf %38, %52 : vector<16x32xf32>
    %cst_19 = arith.constant 9.99999974E-6 : f32
    %54 = vector.broadcast %cst_19 : f32 to vector<16x1xf32>
    %55 = arith.addf %51, %54 : vector<16x1xf32>
    %56 = math.rsqrt %55 : vector<16x1xf32>
    %57 = vector.broadcast %56 : vector<16x1xf32> to vector<16x32xf32>
    %58 = arith.mulf %53, %57 : vector<16x32xf32>
    %59 = vector.broadcast %39 : vector<1x32xf32> to vector<16x32xf32>
    %60 = arith.mulf %58, %59 : vector<16x32xf32>
    %61 = vector.broadcast %40 : vector<1x32xf32> to vector<16x32xf32>
    %62 = arith.addf %60, %61 : vector<16x32xf32>
    %63 = arith.truncf %62 : vector<16x32xf32> to vector<16x32xbf16>
    %c0_20 = arith.constant 0 : index
    %c0_21 = arith.constant 0 : index
    %64 = vector.load %arg5[%c0_20, %c0_21] : memref<32x128xbf16, #tpu.memory_space<vmem>>, vector<32x128xbf16>
    %cst_22 = arith.constant dense<0.000000e+00> : vector<16x128xf32>
    %65 = tpu.matmul %63, %64, %cst_22 {dimension_numbers = #tpu.dot_dimension_numbers<[1], [0], [0], [1], [0, 0, 1, 1], [], []>} : vector<16x32xbf16>, vector<32x128xbf16>, vector<16x128xf32> -> vector<16x128xf32>
    %c0_23 = arith.constant 0 : index
    %c0_24 = arith.constant 0 : index
    %66 = vector.load %arg6[%c0_23, %c0_24] : memref<1x128xf32, #tpu.memory_space<vmem>>, vector<1x128xf32>
    %67 = vector.broadcast %66 : vector<1x128xf32> to vector<16x128xf32>
    %68 = arith.addf %65, %67 : vector<16x128xf32>
    %cst_25 = arith.constant 0.000000e+00 : f32
    %69 = vector.broadcast %cst_25 : f32 to vector<16x128xf32>
    %70 = arith.maximumf %68, %69 : vector<16x128xf32>
    %71 = arith.truncf %70 : vector<16x128xf32> to vector<16x128xbf16>
    %c0_26 = arith.constant 0 : index
    %c0_27 = arith.constant 0 : index
    %72 = vector.load %arg7[%c0_26, %c0_27] : memref<128x32xbf16, #tpu.memory_space<vmem>>, vector<128x32xbf16>
    %cst_28 = arith.constant dense<0.000000e+00> : vector<16x32xf32>
    %73 = tpu.matmul %71, %72, %cst_28 {dimension_numbers = #tpu.dot_dimension_numbers<[1], [0], [0], [1], [0, 0, 1, 1], [], []>} : vector<16x128xbf16>, vector<128x32xbf16>, vector<16x32xf32> -> vector<16x32xf32>
    %c3 = arith.constant 3 : index
    %c0_29 = arith.constant 0 : index
    %74 = vector.load %arg4[%c3, %c0_29] : memref<6x32xf32, #tpu.memory_space<vmem>>, vector<1x32xf32>
    %75 = vector.broadcast %74 : vector<1x32xf32> to vector<16x32xf32>
    %76 = arith.addf %73, %75 : vector<16x32xf32>
    %77 = arith.addf %76, %62 : vector<16x32xf32>
    %c4 = arith.constant 4 : index
    %c0_30 = arith.constant 0 : index
    %78 = vector.load %arg4[%c4, %c0_30] : memref<6x32xf32, #tpu.memory_space<vmem>>, vector<1x32xf32>
    %c5 = arith.constant 5 : index
    %c0_31 = arith.constant 0 : index
    %79 = vector.load %arg4[%c5, %c0_31] : memref<6x32xf32, #tpu.memory_space<vmem>>, vector<1x32xf32>
    %cst_32 = arith.constant dense<0.000000e+00> : vector<16xf32>
    %80 = vector.multi_reduction <add>, %77, %cst_32 [1] : vector<16x32xf32> to vector<16xf32>
    %81 = vector.shape_cast %80 : vector<16xf32> to vector<16x1xf32>
    %cst_33 = arith.constant 3.200000e+01 : f32
    %82 = vector.broadcast %cst_33 : f32 to vector<16x1xf32>
    %83 = arith.divf %81, %82 : vector<16x1xf32>
    %84 = vector.broadcast %83 : vector<16x1xf32> to vector<16x32xf32>
    %85 = arith.subf %77, %84 : vector<16x32xf32>
    %86 = arith.mulf %85, %85 : vector<16x32xf32>
    %cst_34 = arith.constant dense<0.000000e+00> : vector<16xf32>
    %87 = vector.multi_reduction <add>, %86, %cst_34 [1] : vector<16x32xf32> to vector<16xf32>
    %88 = vector.shape_cast %87 : vector<16xf32> to vector<16x1xf32>
    %cst_35 = arith.constant 3.200000e+01 : f32
    %89 = vector.broadcast %cst_35 : f32 to vector<16x1xf32>
    %90 = arith.divf %88, %89 : vector<16x1xf32>
    %91 = vector.broadcast %83 : vector<16x1xf32> to vector<16x32xf32>
    %92 = arith.subf %77, %91 : vector<16x32xf32>
    %cst_36 = arith.constant 9.99999974E-6 : f32
    %93 = vector.broadcast %cst_36 : f32 to vector<16x1xf32>
    %94 = arith.addf %90, %93 : vector<16x1xf32>
    %95 = math.rsqrt %94 : vector<16x1xf32>
    %96 = vector.broadcast %95 : vector<16x1xf32> to vector<16x32xf32>
    %97 = arith.mulf %92, %96 : vector<16x32xf32>
    %98 = vector.broadcast %78 : vector<1x32xf32> to vector<16x32xf32>
    %99 = arith.mulf %97, %98 : vector<16x32xf32>
    %100 = vector.broadcast %79 : vector<1x32xf32> to vector<16x32xf32>
    %101 = arith.addf %99, %100 : vector<16x32xf32>
    %102 = vector.shape_cast %101 : vector<16x32xf32> to vector<2x8x32xf32>
    %c0_37 = arith.constant 0 : index
    %c0_38 = arith.constant 0 : index
    %c0_39 = arith.constant 0 : index
    %103 = vector.load %arg8[%c0_37, %c0_38, %c0_39] : memref<2x8x32xf32, #tpu.memory_space<vmem>>, vector<2x8x32xf32>
    tpu.vector_store %arg8[%c0_37, %c0_38, %c0_39], %102 {strides = array<i32>} : memref<2x8x32xf32, #tpu.memory_space<vmem>>, vector<2x8x32xf32>,
    return
  }
  func.func @transform_0(%arg0: i32) -> (i32, i32, i32) {
    %c0_i32 = arith.constant 0 : i32
    %c0_i32_0 = arith.constant 0 : i32
    %c0_i32_1 = arith.constant 0 : i32
    %c0_i32_2 = arith.constant 0 : i32
    return %c0_i32, %c0_i32_0, %c0_i32_1 : i32, i32, i32
  }
  func.func @transform_1(%arg0: i32) -> (i32, i32) {
    %c0_i32 = arith.constant 0 : i32
    %c0_i32_0 = arith.constant 0 : i32
    %c0_i32_1 = arith.constant 0 : i32
    return %c0_i32, %c0_i32_0 : i32, i32
  }
  func.func @transform_2(%arg0: i32) -> (i32, i32) {
    %c0_i32 = arith.constant 0 : i32
    %c0_i32_0 = arith.constant 0 : i32
    %c0_i32_1 = arith.constant 0 : i32
    return %c0_i32, %c0_i32_0 : i32, i32
  }
  func.func @transform_3(%arg0: i32) -> (i32, i32) {
    %c0_i32 = arith.constant 0 : i32
    %c0_i32_0 = arith.constant 0 : i32
    %c0_i32_1 = arith.constant 0 : i32
    return %c0_i32, %c0_i32_0 : i32, i32
  }
  func.func @transform_4(%arg0: i32) -> (i32, i32) {
    %c0_i32 = arith.constant 0 : i32
    %c0_i32_0 = arith.constant 0 : i32
    %c0_i32_1 = arith.constant 0 : i32
    return %c0_i32, %c0_i32_0 : i32, i32
  }
  func.func @transform_5(%arg0: i32) -> (i32, i32) {
    %c0_i32 = arith.constant 0 : i32
    %c0_i32_0 = arith.constant 0 : i32
    %c0_i32_1 = arith.constant 0 : i32
    return %c0_i32, %c0_i32_0 : i32, i32
  }
  func.func @transform_6(%arg0: i32) -> (i32, i32) {
    %c0_i32 = arith.constant 0 : i32
    %c0_i32_0 = arith.constant 0 : i32
    %c0_i32_1 = arith.constant 0 : i32
    return %c0_i32, %c0_i32_0 : i32, i32
  }
  func.func @transform_7(%arg0: i32) -> (i32, i32, i32) {
    %c0_i32 = arith.constant 0 : i32
    %c0_i32_0 = arith.constant 0 : i32
    %c0_i32_1 = arith.constant 0 : i32
    %c0_i32_2 = arith.constant 0 : i32
    return %c0_i32, %c0_i32_0, %c0_i32_1 : i32, i32, i32
  }
}

</mosaic_0001>

<bundles_post_ra>
// kernel: tpu_custom_call.1
= control target key start
LH: loop header
LB: loop body
LE: loop exit
PB: predicated region body
PF: predicated region fallthrough
CT: control target
= control target key end

     0   :  { %v5986_v1 = vmov 0.0   ;;  %vm5987_vm0 = vmmov 0   ;;  %vm47_vm1 = vcmask 261120   ;;  %s7152_s0 = inlined_call_operand.vmem [shape: f32[2,8,32], index: 0, kind: input, shape index: {}]   ;;  %s7153_s1 = inlined_call_operand.vmem [shape: bf16[32,96], index: 1, kind: input, shape index: {}]   ;;  %s7154_s2 = inlined_call_operand.vmem [shape: bf16[32,32], index: 2, kind: input, shape index: {}]   ;;  %s7155_s3 = inlined_call_operand.vmem [shape: f32[6,32], index: 3, kind: input, shape index: {}]   ;;  %s7156_s4 = inlined_call_operand.vmem [shape: bf16[32,128], index: 4, kind: input, shape index: {}]   ;;  %s7157_s5 = inlined_call_operand.vmem [shape: f32[1,128], index: 5, kind: input, shape index: {}]   ;;  %s7158_s6 = inlined_call_operand.vmem [shape: bf16[128,32], index: 6, kind: input, shape index: {}]   ;;  %s7159_s7 = inlined_call_operand.hbm [shape: f32[2,8,32], index: 7, kind: output, shape index: {}]  }
   0x1   :  { %v5874_v0 = vld [vmem:[%s7153_s1] sm:$0xff]   ;;  %5613 = vmatprep.subr.bf16.mxu0 %v5986_v1  ;;  %v5875_v2 = vld [vmem:[%s7153_s1 + $0x8] sm:$0xff]   ;;  %5626 = vmatprep.subr.mxu1 %v5986_v1 }
   0x2   :  { %5614 = vmatpush3.bf16.msra.mxu0 %v5874_v0  ;;  %5617 = vmatprep.mubr.msk.bf16.mxu0 %vm5987_vm0, %v5986_v1  ;;  %v28_v3 = vld [vmem:[%s7152_s0] sm:$0xff]  ;;  %v29_v4 = vld [vmem:[%s7152_s0 + $0x8] sm:$0xff] }
   0x3   :  { %5615 = vmatprep.subr.bf16.mxu0 %v5986_v1  ;;  %5628 = vmatprep.mubr.msk.f32.mxu1 %vm5987_vm0, %v5986_v1  ;;  %v30_v5 = vpack.c.bf16 %v29_v4, %v28_v3 }
   0x6   :  { %5616 = vmatpush3.bf16.msra.mxu0 %v5875_v2 }
   0x7   :  { %5621 = vmatprep.subr.mxu0 %v5986_v1 }
   0x9   :  { %5618 = vmatmul.mubr.msk.bf16.vlgmr.msra.gmra.mrb[0].mxu0 %vm47_vm1, %v30_v5 }
   0xa   :  { %5623 = vmatprep.mubr.msk.f32.mxu0 %vm5987_vm0, %v5986_v1 }
   0xb   :  { %12 = vsyncpa [#allocation3], 0  ;;  %s5988_s1 = smov 116   ;;  %s5989_s9 = smov 124   ;;  %v5996_v10 = vmov 1983009808   ;;  %v141_v12 = vlaneseq }
   0xc   :  { %s5990_s10 = smov 112   ;;  %s5991_s11 = smov 120   ;;  %v139_v11 = vunpack.c.l.s4 %v5996_v10  ;;  %v5997_v13 = vmov 1934713408   ;;  %vm1864_vm2 = vcmask 31744   ;;  %vm3081_vm3 = vcmask 64512  }
   0xd   :  { %s5992_s12 = smov 104   ;;  %s5993_s13 = smov 108   ;;  %v203_v14 = vunpack.c.l.s4 %v5997_v13  ;;  %v142_v16 = vshrl.u32 %v141_v12, 7  ;;  %vm5030_vm4 = vcmask 97280   ;;  %vm5033_vm5 = vcmask 130048  }
   0xe   :  { %s5994_s14 = smov 100   ;;  %s5995_s15 = smov 96   ;;  %v140_v15 = vunpack.c.0.s8 %v139_v11  ;;  %vm5036_vm6 = vcmask 162816   ;;  %vm5039_vm7 = vcmask 195584   ;;  %vm5042_vm8 = vcmask 228352  }
   0xf   :  { %v204_v21 = vunpack.c.0.s8 %v203_v14  ;;  %s5998_s16 = smov 64   ;;  %s5999_s17 = smov 8  }
  0x10   :  { %v6101_v22 = vsub.s32 %v140_v15, %v142_v16  ;;  %s6000_s18 = smov 4   ;;  %s6001_s19 = smov 12  }
  0x11   :  { %v6115_v27 = vsub.s32 %v204_v21, %v142_v16  ;;  %s6003_s24 = smov 16   ;;  %s6004_s25 = smov 28  }
  0x12   :  { %s6005_s26 = smov 24  }
  0xdc   :  { %v6071_v6 = vpop.f32.mrb[0].mxu0 }
  0xdd   :  { %106 = vrot.lane.b32.xlu1 %v6071_v6, %s5988_s1  ;;  %94 = vrot.lane.b32.xlu0 %v6071_v6, %s5989_s9  ;;  %v5619_v7 = vpop.f32.mrb[1].mxu0 }
  0xde   :  { %v6075_v8 = vpop.f32.mrb[2].mxu0 }
  0xdf   :  { %v5620_v9 = vpop.f32.mrb[3].mxu0 }
  0xe1   :  { %112 = vrot.lane.b32.xlu1 %v6071_v6, %s5990_s10  ;;  %100 = vrot.lane.b32.xlu0 %v6071_v6, %s5991_s11 }
  0xe5   :  { %124 = vrot.lane.b32.xlu1 %v6071_v6, %s5992_s12  ;;  %118 = vrot.lane.b32.xlu0 %v6071_v6, %s5993_s13 }
  0xe9   :  { %130 = vrot.lane.b32.xlu0 %v6071_v6, %s5994_s14  ;;  %96 = vrot.lane.b32.xlu1 %v6075_v8, %s5989_s9 }
  0xed   :  { %102 = vrot.lane.b32.xlu0 %v6075_v8, %s5991_s11  ;;  %108 = vrot.lane.b32.xlu1 %v6075_v8, %s5988_s1 }
  0xf1   :  { %114 = vrot.lane.b32.xlu0 %v6075_v8, %s5990_s10  ;;  %120 = vrot.lane.b32.xlu1 %v6075_v8, %s5993_s13 }
  0xf5   :  { %126 = vrot.lane.b32.xlu0 %v6075_v8, %s5992_s12  ;;  %132 = vrot.lane.b32.xlu1 %v6075_v8, %s5994_s14  ;;  %s6006_s12 = smov [#allocation2]  }
  0xf6   :  { %s5384_s13 = sshll.u32 %s6006_s12, 4  ;;  %s5385_s13 = int_to_ptr.vmem [resolvable:$true] %s5384_s13 }
  0xf7   :  { %s5962_s14 = scalar_lea.vmem %s5385_s13, 256  ;;  %p5967_p1 = scmp.lt.s32.totalorder %s5385_s13, %s5385_s13 }
  0xf8   :  { %p5963_p0 = scmp.ne.s32.totalorder %s5385_s13, %s5962_s14  ;;  %p5968_p2 = scmp.lt.s32.totalorder %s5962_s14, %s5962_s14 }
  0xf9   :  { %680 = vrot.lane.b32.xlu0 %v6071_v6, %s5995_s15 }
  0xfa   :  { %p5969_p3 = por %p5968_p2, %p5967_p1 }
  0xfc   :  { %p5970_p4 = pnand %p5969_p3, %p5963_p0 }
 0x14f   :  { %v6091_v17 = vpop.permute.xlu1 %106  ;;  %v6093_v18 = vpop.permute.xlu0 %94 }
 0x150   :  { %v152_v19 = vcombine.low %v6093_v18, %v6091_v17  ;;  %v153_v20 = vcombine.high %v6093_v18, %v6091_v17  ;;  %684 = vrot.lane.b32.xlu1 %v6093_v18, %s5995_s15 }
 0x152   :  { %v160_v28 = vrot.slane %v152_v19, %v6101_v22  ;;  %v167_v29 = vrot.slane %v153_v20, %v6101_v22 }
 0x153   :  { %v6103_v23 = vpop.permute.xlu1 %112  ;;  %v6105_v24 = vpop.permute.xlu0 %100 }
 0x154   :  { %v136_v25 = vcombine.low %v6071_v6, %v6105_v24  ;;  %v137_v26 = vcombine.high %v6071_v6, %v6105_v24  ;;  %688 = vrot.lane.b32.xlu0 %v6105_v24, %s5995_s15  ;;  %692 = vrot.lane.b32.xlu1 %v6091_v17, %s5995_s15 }
 0x156   :  { %v144_v30 = vrot.slane %v136_v25, %v6101_v22  ;;  %v151_v31 = vrot.slane %v137_v26, %v6101_v22 }
 0x157   :  { %v6121_v32 = vpop.permute.xlu1 %124  ;;  %v6123_v33 = vpop.permute.xlu0 %118 }
 0x158   :  { %v200_v34 = vcombine.low %v144_v30, %v160_v28  ;;  %v201_v35 = vcombine.high %v144_v30, %v160_v28  ;;  %v216_v36 = vcombine.low %v151_v31, %v167_v29  ;;  %v217_v37 = vcombine.high %v151_v31, %v167_v29  ;;  %696 = vrot.lane.b32.xlu0 %v6103_v23, %s5995_s15 }
 0x159   :  { %v168_v38 = vcombine.low %v6103_v23, %v6121_v32  ;;  %v169_v39 = vcombine.high %v6103_v23, %v6121_v32  ;;  %700 = vrot.lane.b32.xlu1 %v6123_v33, %s5995_s15 }
 0x15a   :  { %v208_v40 = vrot.slane %v200_v34, %v6115_v27  ;;  %v215_v41 = vrot.slane %v201_v35, %v6115_v27  ;;  %v224_v42 = vrot.slane %v216_v36, %v6115_v27  ;;  %v231_v43 = vrot.slane %v217_v37, %v6115_v27 }
 0x15b   :  { %v6137_v44 = vpop.permute.xlu0 %130  ;;  %v6139_v45 = vpop.permute.xlu1 %96  ;;  %v176_v52 = vrot.slane %v168_v38, %v6101_v22  ;;  %v183_v53 = vrot.slane %v169_v39, %v6101_v22 }
 0x15c   :  { %v5398_v46 = vcombine.low %v208_v40, %v215_v41  ;;  %v5400_v47 = vcombine.high %v208_v40, %v215_v41  ;;  %v5402_v48 = vcombine.low %v224_v42, %v231_v43  ;;  %v5404_v49 = vcombine.high %v224_v42, %v231_v43  ;;  %704 = vrot.lane.b32.xlu0 %v6121_v32, %s5995_s15 }
 0x15d   :  { %v184_v50 = vcombine.low %v6123_v33, %v6137_v44  ;;  %v185_v51 = vcombine.high %v6123_v33, %v6137_v44  ;;  %708 = vrot.lane.b32.xlu1 %v6137_v44, %s5995_s15 }
 0x15e   :  { %v416_v11 = vrot.slane %v5398_v46, %v6101_v22  ;;  %v432_v12 = vrot.slane %v5400_v47, %v6101_v22  ;;  %v448_v13 = vrot.slane %v5402_v48, %v6101_v22  ;;  %v464_v14 = vrot.slane %v5404_v49, %v6101_v22 }
 0x15f   :  { %v192_v54 = vrot.slane %v184_v50, %v6101_v22  ;;  %v199_v55 = vrot.slane %v185_v51, %v6101_v22  ;;  %v6153_v56 = vpop.permute.xlu0 %102  ;;  %v6155_v57 = vpop.permute.xlu1 %108 }
 0x160   :  { %682 = vrot.lane.b32.xlu0 %v6075_v8, %s5995_s15  ;;  %v472_v19 = vcombine.low %v416_v11, %v432_v12  ;;  %v504_v20 = vcombine.low %v448_v13, %v464_v14  ;;  %v473_v21 = vcombine.high %v416_v11, %v432_v12  ;;  %v505_v25 = vcombine.high %v448_v13, %v464_v14 }
 0x161   :  { %v232_v58 = vcombine.low %v176_v52, %v192_v54  ;;  %v233_v59 = vcombine.high %v176_v52, %v192_v54  ;;  %v248_v60 = vcombine.low %v183_v53, %v199_v55  ;;  %v249_v61 = vcombine.high %v183_v53, %v199_v55  ;;  %686 = vrot.lane.b32.xlu1 %v6139_v45, %s5995_s15 }
 0x162   :  { %v6194_v31 = vrot.slane %v472_v19, %v6115_v27  ;;  %v6197_v34 = vrot.slane %v504_v20, %v6115_v27  ;;  %v6200_v35 = vrot.slane %v473_v21, %v6115_v27  ;;  %v6203_v36 = vrot.slane %v505_v25, %v6115_v27 }
 0x163   :  { %v240_v62 = vrot.slane %v232_v58, %v6115_v27  ;;  %v247_v63 = vrot.slane %v233_v59, %v6115_v27  ;;  %v256_v0 = vrot.slane %v248_v60, %v6115_v27  ;;  %v263_v2 = vrot.slane %v249_v61, %v6115_v27  ;;  %v6167_v9 = vpop.permute.xlu0 %114  ;;  %v6171_v10 = vpop.permute.xlu1 %120 }
 0x164   :  { %690 = vrot.lane.b32.xlu0 %v6153_v56, %s5995_s15  ;;  %v536_v37 = vcombine.low %v6194_v31, %v6197_v34  ;;  %v537_v38 = vcombine.high %v6194_v31, %v6197_v34  ;;  %v538_v39 = vcombine.low %v6200_v35, %v6203_v36  ;;  %v539_v40 = vcombine.high %v6200_v35, %v6203_v36 }
 0x165   :  { %v5399_v3 = vcombine.low %v240_v62, %v247_v63  ;;  %v5401_v4 = vcombine.high %v240_v62, %v247_v63  ;;  %v5403_v5 = vcombine.low %v256_v0, %v263_v2  ;;  %v5405_v7 = vcombine.high %v256_v0, %v263_v2  ;;  %694 = vrot.lane.b32.xlu1 %v6155_v57, %s5995_s15 }
 0x166   :  { %v273_v52 = vcombine.high %v6075_v8, %v6153_v56 }
 0x167   :  { %v6181_v15 = vpop.permute.xlu0 %126  ;;  %v6183_v16 = vpop.permute.xlu1 %132  ;;  %v423_v26 = vrot.slane %v5399_v3, %v6101_v22  ;;  %v439_v28 = vrot.slane %v5401_v4, %v6101_v22  ;;  %v455_v29 = vrot.slane %v5403_v5, %v6101_v22  ;;  %v471_v30 = vrot.slane %v5405_v7, %v6101_v22 }
 0x168   :  { %698 = vrot.lane.b32.xlu0 %v6167_v9, %s5995_s15  ;;  %v287_v53 = vrot.slane %v273_v52, %v6101_v22  ;;  %v304_v55 = vcombine.low %v6167_v9, %v6181_v15  ;;  %v320_v58 = vcombine.low %v6171_v10, %v6183_v16  ;;  %v321_v59 = vcombine.high %v6171_v10, %v6183_v16 }
 0x169   :  { %702 = vrot.lane.b32.xlu1 %v6171_v10, %s5995_s15  ;;  %v488_v41 = vcombine.low %v423_v26, %v439_v28  ;;  %v520_v42 = vcombine.low %v455_v29, %v471_v30  ;;  %v489_v43 = vcombine.high %v423_v26, %v439_v28  ;;  %v521_v46 = vcombine.high %v455_v29, %v471_v30 }
 0x16a   :  { %v312_v0 = vrot.slane %v304_v55, %v6101_v22  ;;  %v328_v3 = vrot.slane %v320_v58, %v6101_v22  ;;  %v335_v4 = vrot.slane %v321_v59, %v6101_v22 }
 0x16b   :  { %v6223_v47 = vrot.slane %v520_v42, %v6115_v27  ;;  %v6226_v48 = vrot.slane %v489_v43, %v6115_v27  ;;  %v6229_v49 = vrot.slane %v521_v46, %v6115_v27 }
 0x16c   :  { %706 = vrot.lane.b32.xlu0 %v6181_v15, %s5995_s15  ;;  %v368_v13 = vcombine.low %v312_v0, %v328_v3  ;;  %v369_v14 = vcombine.high %v312_v0, %v328_v3 }
 0x16d   :  { %710 = vrot.lane.b32.xlu1 %v6183_v16, %s5995_s15  ;;  %v542_v50 = vcombine.low %v6226_v48, %v6229_v49  ;;  %v543_v51 = vcombine.high %v6226_v48, %v6229_v49 }
 0x16e   :  { %v376_v29 = vrot.slane %v368_v13, %v6115_v27  ;;  %v383_v30 = vrot.slane %v369_v14, %v6115_v27 }
 0x170   :  { %1276 = vrot.lane.b32.xlu0 %v6093_v18, %s5998_s16  ;;  %v6220_v18 = vrot.slane %v488_v41, %v6115_v27 }
 0x171   :  { %1272 = vrot.lane.b32.xlu1 %v6071_v6, %s5998_s16 }
 0x172   :  { %v540_v6 = vcombine.low %v6220_v18, %v6223_v47 }
 0x174   :  { %1292 = vrot.lane.b32.xlu0 %v6123_v33, %s5998_s16  ;;  %v541_v33 = vcombine.high %v6220_v18, %v6223_v47 }
 0x175   :  { %1280 = vrot.lane.b32.xlu1 %v6105_v24, %s5998_s16  ;;  %v272_v24 = vcombine.low %v6075_v8, %v6153_v56 }
 0x179   :  { %1284 = vrot.lane.b32.xlu1 %v6091_v17, %s5998_s16  ;;  %v288_v17 = vcombine.low %v6139_v45, %v6155_v57 }
 0x17d   :  { %1288 = vrot.lane.b32.xlu1 %v6103_v23, %s5998_s16  ;;  %v289_v23 = vcombine.high %v6139_v45, %v6155_v57 }
 0x17f   :  { %v303_v54 = vrot.slane %v289_v23, %v6101_v22  ;;  %v5409_v23 = vcombine.high %v376_v29, %v383_v30 }
 0x181   :  { %1296 = vrot.lane.b32.xlu1 %v6121_v32, %s5998_s16  ;;  %v280_v32 = vrot.slane %v272_v24, %v6101_v22  ;;  %v352_v62 = vcombine.low %v287_v53, %v303_v54  ;;  %v353_v63 = vcombine.high %v287_v53, %v303_v54 }
 0x183   :  { %v360_v11 = vrot.slane %v352_v62, %v6115_v27  ;;  %v367_v12 = vrot.slane %v353_v63, %v6115_v27 }
 0x185   :  { %1300 = vrot.lane.b32.xlu1 %v6137_v44, %s5998_s16  ;;  %v296_v44 = vrot.slane %v288_v17, %v6101_v22  ;;  %v5410_v26 = vcombine.low %v360_v11, %v367_v12  ;;  %v5412_v28 = vcombine.high %v360_v11, %v367_v12  ;;  %v5407_v17 = vcombine.low %v376_v29, %v383_v30 }
 0x187   :  { %v336_v60 = vcombine.low %v280_v32, %v296_v44  ;;  %v337_v61 = vcombine.high %v280_v32, %v296_v44  ;;  %v584_v24 = vrot.slane %v5410_v26, %v6101_v22  ;;  %v600_v52 = vrot.slane %v5412_v28, %v6101_v22  ;;  %v681_v44 = vpop.permute.xlu0 %680 }
 0x189   :  { %1274 = vrot.lane.b32.xlu1 %v6075_v8, %s5998_s16  ;;  %v305_v8 = vcombine.high %v6167_v9, %v6181_v15  ;;  %v344_v5 = vrot.slane %v336_v60, %v6115_v27  ;;  %v351_v7 = vrot.slane %v337_v61, %v6115_v27  ;;  %v641_v59 = vcombine.high %v584_v24, %v600_v52 }
 0x18a   :  { %v559_v60 = vrot.slane %v5407_v17, %v6101_v22  ;;  %v575_v61 = vrot.slane %v5409_v23, %v6101_v22 }
 0x18b   :  { %v319_v2 = vrot.slane %v305_v8, %v6101_v22  ;;  %v5406_v21 = vcombine.low %v344_v5, %v351_v7  ;;  %v5408_v25 = vcombine.high %v344_v5, %v351_v7  ;;  %v640_v8 = vcombine.low %v584_v24, %v600_v52 }
 0x18c   :  { %v6301_v14 = vrot.slane %v641_v59, %v6115_v27  ;;  %v624_v28 = vcombine.low %v559_v60, %v575_v61  ;;  %v625_v30 = vcombine.high %v559_v60, %v575_v61 }
 0x18d   :  { %v384_v19 = vcombine.low %v319_v2, %v335_v4  ;;  %v385_v20 = vcombine.high %v319_v2, %v335_v4  ;;  %v552_v43 = vrot.slane %v5406_v21, %v6101_v22  ;;  %v568_v46 = vrot.slane %v5408_v25, %v6101_v22 }
 0x18e   :  { %v6295_v12 = vrot.slane %v640_v8, %v6115_v27  ;;  %v6320_v59 = vrot.slane %v624_v28, %v6115_v27  ;;  %v6326_v61 = vrot.slane %v625_v30, %v6115_v27 }
 0x18f   :  { %v392_v41 = vrot.slane %v384_v19, %v6115_v27  ;;  %v399_v42 = vrot.slane %v385_v20, %v6115_v27  ;;  %v608_v55 = vcombine.low %v552_v43, %v568_v46  ;;  %v609_v58 = vcombine.high %v552_v43, %v568_v46 }
 0x191   :  { %v5411_v32 = vcombine.low %v392_v41, %v399_v42  ;;  %v5413_v53 = vcombine.high %v392_v41, %v399_v42  ;;  %v6292_v11 = vrot.slane %v608_v55, %v6115_v27  ;;  %v6298_v13 = vrot.slane %v609_v58, %v6115_v27 }
 0x193   :  { %v591_v62 = vrot.slane %v5411_v32, %v6101_v22  ;;  %v607_v63 = vrot.slane %v5413_v53, %v6101_v22  ;;  %v672_v17 = vcombine.low %v6292_v11, %v6295_v12  ;;  %v673_v23 = vcombine.high %v6292_v11, %v6295_v12 }
 0x194   :  { %v674_v32 = vcombine.low %v6298_v13, %v6301_v14  ;;  %v675_v53 = vcombine.high %v6298_v13, %v6301_v14 }
 0x195   :  { %v656_v29 = vcombine.low %v591_v62, %v607_v63  ;;  %v657_v41 = vcombine.high %v591_v62, %v607_v63 }
 0x197   :  { %v6323_v60 = vrot.slane %v656_v29, %v6115_v27  ;;  %v6329_v62 = vrot.slane %v657_v41, %v6115_v27 }
 0x199   :  { %v676_v35 = vcombine.low %v6320_v59, %v6323_v60  ;;  %v677_v36 = vcombine.high %v6320_v59, %v6323_v60 }
 0x1c2   :  { %v685_v54 = vpop.permute.xlu1 %684 }
 0x1c6   :  { %v689_v0 = vpop.permute.xlu0 %688  ;;  %v693_v2 = vpop.permute.xlu1 %692 }
 0x1c7   :  { %v728_v3 = vcombine.low %v681_v44, %v689_v0  ;;  %v729_v4 = vcombine.high %v681_v44, %v689_v0  ;;  %v744_v5 = vcombine.low %v685_v54, %v693_v2  ;;  %v745_v7 = vcombine.high %v685_v54, %v693_v2 }
 0x1c9   :  { %v736_v19 = vrot.slane %v728_v3, %v6101_v22  ;;  %v743_v20 = vrot.slane %v729_v4, %v6101_v22  ;;  %v752_v21 = vrot.slane %v744_v5, %v6101_v22  ;;  %v759_v25 = vrot.slane %v745_v7, %v6101_v22 }
 0x1ca   :  { %v697_v26 = vpop.permute.xlu0 %696 }
 0x1cb   :  { %v792_v42 = vcombine.low %v736_v19, %v752_v21  ;;  %v793_v43 = vcombine.high %v736_v19, %v752_v21  ;;  %v808_v46 = vcombine.low %v743_v20, %v759_v25  ;;  %v809_v24 = vcombine.high %v743_v20, %v759_v25  ;;  %v701_v52 = vpop.permute.xlu1 %700 }
 0x1cd   :  { %v800_v44 = vrot.slane %v792_v42, %v6115_v27  ;;  %v807_v54 = vrot.slane %v793_v43, %v6115_v27  ;;  %v816_v55 = vrot.slane %v808_v46, %v6115_v27  ;;  %v823_v8 = vrot.slane %v809_v24, %v6115_v27 }
 0x1ce   :  { %v705_v58 = vpop.permute.xlu0 %704 }
 0x1cf   :  { %v5414_v63 = vcombine.low %v800_v44, %v807_v54  ;;  %v5416_v0 = vcombine.high %v800_v44, %v807_v54  ;;  %v5418_v2 = vcombine.low %v816_v55, %v823_v8  ;;  %v5420_v3 = vcombine.high %v816_v55, %v823_v8  ;;  %v709_v4 = vpop.permute.xlu1 %708 }
 0x1d0   :  { %v760_v5 = vcombine.low %v697_v26, %v705_v58  ;;  %v761_v7 = vcombine.high %v697_v26, %v705_v58  ;;  %v776_v19 = vcombine.low %v701_v52, %v709_v4  ;;  %v777_v20 = vcombine.high %v701_v52, %v709_v4 }
 0x1d1   :  { %v1008_v21 = vrot.slane %v5414_v63, %v6101_v22  ;;  %v1024_v25 = vrot.slane %v5416_v0, %v6101_v22  ;;  %v1040_v28 = vrot.slane %v5418_v2, %v6101_v22  ;;  %v1056_v29 = vrot.slane %v5420_v3, %v6101_v22 }
 0x1d2   :  { %v768_v30 = vrot.slane %v760_v5, %v6101_v22  ;;  %v775_v41 = vrot.slane %v761_v7, %v6101_v22  ;;  %v784_v42 = vrot.slane %v776_v19, %v6101_v22  ;;  %v791_v43 = vrot.slane %v777_v20, %v6101_v22  ;;  %v683_v46 = vpop.permute.xlu0 %682 }
 0x1d3   :  { %v1064_v26 = vcombine.low %v1008_v21, %v1024_v25  ;;  %v1065_v24 = vcombine.high %v1008_v21, %v1024_v25  ;;  %v1096_v52 = vcombine.low %v1040_v28, %v1056_v29  ;;  %v1097_v44 = vcombine.high %v1040_v28, %v1056_v29  ;;  %v687_v54 = vpop.permute.xlu1 %686 }
 0x1d4   :  { %v824_v55 = vcombine.low %v768_v30, %v784_v42  ;;  %v825_v8 = vcombine.high %v768_v30, %v784_v42  ;;  %v840_v58 = vcombine.low %v775_v41, %v791_v43  ;;  %v841_v63 = vcombine.high %v775_v41, %v791_v43 }
 0x1d5   :  { %v1072_v0 = vrot.slane %v1064_v26, %v6115_v27  ;;  %v1104_v2 = vrot.slane %v1096_v52, %v6115_v27  ;;  %v1079_v3 = vrot.slane %v1065_v24, %v6115_v27  ;;  %v1111_v4 = vrot.slane %v1097_v44, %v6115_v27 }
 0x1d6   :  { %v832_v5 = vrot.slane %v824_v55, %v6115_v27  ;;  %v839_v7 = vrot.slane %v825_v8, %v6115_v27  ;;  %v848_v19 = vrot.slane %v840_v58, %v6115_v27  ;;  %v855_v20 = vrot.slane %v841_v63, %v6115_v27  ;;  %v691_v21 = vpop.permute.xlu0 %690 }
 0x1d7   :  { %v864_v25 = vcombine.low %v683_v46, %v691_v21  ;;  %v865_v28 = vcombine.high %v683_v46, %v691_v21  ;;  %v695_v29 = vpop.permute.xlu1 %694  ;;  %v1128_v30 = vcombine.low %v1072_v0, %v1104_v2  ;;  %v1129_v41 = vcombine.high %v1072_v0, %v1104_v2 }
 0x1d8   :  { %v5415_v42 = vcombine.low %v832_v5, %v839_v7  ;;  %v5417_v43 = vcombine.high %v832_v5, %v839_v7  ;;  %v5419_v26 = vcombine.low %v848_v19, %v855_v20  ;;  %v5421_v24 = vcombine.high %v848_v19, %v855_v20 }
 0x1d9   :  { %v872_v52 = vrot.slane %v864_v25, %v6101_v22  ;;  %v879_v44 = vrot.slane %v865_v28, %v6101_v22  ;;  %v880_v55 = vcombine.low %v687_v54, %v695_v29  ;;  %v881_v8 = vcombine.high %v687_v54, %v695_v29  ;;  %5622 = vmatpush3.xpose.msk.msra.mxu0 %vm1864_vm2, %v1128_v30 }
 0x1da   :  { %v6351_v58 = vrot.slane %v5415_v42, %v6101_v22  ;;  %v6354_v46 = vrot.slane %v5417_v43, %v6101_v22  ;;  %v6357_v63 = vrot.slane %v5419_v26, %v6101_v22  ;;  %v6360_v0 = vrot.slane %v5421_v24, %v6101_v22  ;;  %5627 = vmatpush3.xpose.msk.msra.mxu1 %vm1864_vm2, %v1129_v41  ;;  %v699_v2 = vpop.permute.xlu0 %698 }
 0x1db   :  { %v888_v5 = vrot.slane %v880_v55, %v6101_v22  ;;  %v895_v54 = vrot.slane %v881_v8, %v6101_v22  ;;  %v703_v7 = vpop.permute.xlu1 %702  ;;  %5631 = vmatprep.subr.mxu1 %v5986_v1  ;;  %5636 = vmatprep.subr.mxu0 %v5986_v1  ;;  %v1130_v19 = vcombine.low %v1079_v3, %v1111_v4 }
 0x1dc   :  { %v1080_v20 = vcombine.low %v6351_v58, %v6354_v46  ;;  %v1081_v21 = vcombine.high %v6351_v58, %v6354_v46  ;;  %v1112_v25 = vcombine.low %v6357_v63, %v6360_v0  ;;  %v1113_v28 = vcombine.high %v6357_v63, %v6360_v0  ;;  %5624 = vmatmul.mubr.msk.f32.vlgmr.msra.gmra.mrb[4].mxu0 %vm1864_vm2, %v536_v37 }
 0x1dd   :  { %v928_v29 = vcombine.low %v872_v52, %v888_v5  ;;  %v929_v30 = vcombine.high %v872_v52, %v888_v5  ;;  %v944_v41 = vcombine.low %v879_v44, %v895_v54  ;;  %v945_v42 = vcombine.high %v879_v44, %v895_v54  ;;  %5629 = vmatmul.mubr.msk.f32.vlgmr.msra.gmra.mrb[0].mxu1 %vm1864_vm2, %v537_v38 }
 0x1de   :  { %5632 = vmatpush3.xpose.msk.msra.mxu1 %vm1864_vm2, %v1130_v19  ;;  %v1131_v43 = vcombine.high %v1079_v3, %v1111_v4  ;;  %v707_v26 = vpop.permute.xlu0 %706  ;;  %5633 = vmatprep.mubr.msk.f32.mxu1 %vm5987_vm0, %v5986_v1  ;;  %v1088_v24 = vrot.slane %v1080_v20, %v6115_v27  ;;  %v1120_v37 = vrot.slane %v1112_v25, %v6115_v27 }
 0x1df   :  { %v936_v52 = vrot.slane %v928_v29, %v6115_v27  ;;  %v943_v44 = vrot.slane %v929_v30, %v6115_v27  ;;  %v952_v55 = vrot.slane %v944_v41, %v6115_v27  ;;  %v959_v31 = vrot.slane %v945_v42, %v6115_v27  ;;  %v711_v34 = vpop.permute.xlu1 %710  ;;  %5638 = vmatprep.mubr.msk.f32.mxu0 %vm5987_vm0, %v5986_v1 }
 0x1e0   :  { %5637 = vmatpush3.xpose.msk.msra.mxu0 %vm1864_vm2, %v1131_v43  ;;  %v896_v38 = vcombine.low %v699_v2, %v707_v26  ;;  %v897_v3 = vcombine.high %v699_v2, %v707_v26  ;;  %v912_v4 = vcombine.low %v703_v7, %v711_v34  ;;  %v913_v8 = vcombine.high %v703_v7, %v711_v34 }
 0x1e1   :  { %v5422_v58 = vcombine.low %v936_v52, %v943_v44  ;;  %v5424_v46 = vcombine.high %v936_v52, %v943_v44  ;;  %v5426_v63 = vcombine.low %v952_v55, %v959_v31  ;;  %v5428_v0 = vcombine.high %v952_v55, %v959_v31  ;;  %5634 = vmatmul.mubr.msk.f32.vlgmr.msra.gmra.mrb[2].mxu1 %vm1864_vm2, %v538_v39 }
 0x1e2   :  { %v904_v5 = vrot.slane %v896_v38, %v6101_v22  ;;  %v911_v54 = vrot.slane %v897_v3, %v6101_v22  ;;  %v920_v19 = vrot.slane %v912_v4, %v6101_v22  ;;  %v927_v20 = vrot.slane %v913_v8, %v6101_v22  ;;  %5641 = vmatprep.subr.mxu1 %v5986_v1 }
 0x1e3   :  { %v6405_v2 = vrot.slane %v5422_v58, %v6101_v22  ;;  %v6408_v7 = vrot.slane %v5424_v46, %v6101_v22  ;;  %v6411_v25 = vrot.slane %v5426_v63, %v6101_v22  ;;  %v6414_v39 = vrot.slane %v5428_v0, %v6101_v22  ;;  %5639 = vmatmul.mubr.msk.f32.vlgmr.msra.gmra.mrb[6].mxu0 %vm1864_vm2, %v539_v40  ;;  %v6420_v29 = vpop.permute.xlu1 %1272 }
 0x1e4   :  { %v960_v30 = vcombine.low %v904_v5, %v920_v19  ;;  %v961_v41 = vcombine.high %v904_v5, %v920_v19  ;;  %v976_v42 = vcombine.low %v911_v54, %v927_v20  ;;  %v977_v43 = vcombine.high %v911_v54, %v927_v20  ;;  %5646 = vmatprep.subr.mxu0 %v5986_v1 }
 0x1e5   :  { %v1200_v26 = vcombine.low %v6405_v2, %v6408_v7  ;;  %v1232_v52 = vcombine.low %v6411_v25, %v6414_v39  ;;  %5643 = vmatprep.mubr.msk.f32.mxu1 %vm5987_vm0, %v5986_v1  ;;  %5648 = vmatprep.mubr.msk.f32.mxu0 %vm5987_vm0, %v5986_v1  ;;  %v1132_v34 = vcombine.low %v1088_v24, %v1120_v37 }
 0x1e6   :  { %v968_v40 = vrot.slane %v960_v30, %v6115_v27  ;;  %v975_v44 = vrot.slane %v961_v41, %v6115_v27  ;;  %v984_v55 = vrot.slane %v976_v42, %v6115_v27  ;;  %v991_v31 = vrot.slane %v977_v43, %v6115_v27 }
 0x1e7   :  { %v1133_v38 = vcombine.high %v1088_v24, %v1120_v37  ;;  %v1095_v3 = vrot.slane %v1081_v21, %v6115_v27  ;;  %v1127_v4 = vrot.slane %v1113_v28, %v6115_v27  ;;  %v1281_v8 = vpop.permute.xlu1 %1280  ;;  %v1201_v5 = vcombine.high %v6405_v2, %v6408_v7  ;;  %5642 = vmatpush3.xpose.msk.msra.mxu1 %vm1864_vm2, %v1132_v34 }
 0x1e8   :  { %v5423_v58 = vcombine.low %v968_v40, %v975_v44  ;;  %v5425_v46 = vcombine.high %v968_v40, %v975_v44  ;;  %v5427_v63 = vcombine.low %v984_v55, %v991_v31  ;;  %v5429_v0 = vcombine.high %v984_v55, %v991_v31  ;;  %5651 = vmatprep.subr.mxu1 %v5986_v1  ;;  %v1277_v55 = vpop.permute.xlu0 %1276 }
 0x1e9   :  { %5647 = vmatpush3.xpose.msk.msra.mxu0 %vm1864_vm2, %v1133_v38  ;;  %v1320_v54 = vcombine.low %v6420_v29, %v1281_v8  ;;  %v678_v24 = vcombine.low %v6326_v61, %v6329_v62  ;;  %v1233_v20 = vcombine.high %v6411_v25, %v6414_v39  ;;  %v1134_v2 = vcombine.low %v1095_v3, %v1127_v4 }
 0x1ea   :  { %v1151_v21 = vrot.slane %v5423_v58, %v6101_v22  ;;  %v1167_v28 = vrot.slane %v5425_v46, %v6101_v22  ;;  %v1183_v37 = vrot.slane %v5427_v63, %v6101_v22  ;;  %v1199_v19 = vrot.slane %v5429_v0, %v6101_v22  ;;  %5656 = vmatprep.subr.mxu0 %v5986_v1 }
 0x1eb   :  { %v1208_v7 = vrot.slane %v1200_v26, %v6115_v27  ;;  %v1240_v30 = vrot.slane %v1232_v52, %v6115_v27  ;;  %v1285_v41 = vpop.permute.xlu1 %1284  ;;  %5644 = vmatmul.mubr.msk.f32.vlgmr.msra.gmra.mrb[4].mxu1 %vm1864_vm2, %v540_v6  ;;  %v1135_v43 = vcombine.high %v1095_v3, %v1127_v4  ;;  %v1321_v40 = vcombine.high %v6420_v29, %v1281_v8 }
 0x1ec   :  { %v1216_v42 = vcombine.low %v1151_v21, %v1167_v28  ;;  %v1328_v44 = vrot.slane %v1320_v54, %v6101_v22  ;;  %v1217_v25 = vcombine.high %v1151_v21, %v1167_v28  ;;  %v1248_v39 = vcombine.low %v1183_v37, %v1199_v19  ;;  %5649 = vmatmul.mubr.msk.f32.vlgmr.msra.gmra.mrb[8].mxu0 %vm1864_vm2, %v541_v33 }
 0x1ed   :  { %5652 = vmatpush3.xpose.msk.msra.mxu1 %vm1864_vm2, %v1134_v2  ;;  %v1264_v26 = vcombine.low %v1208_v7, %v1240_v30  ;;  %5657 = vmatpush3.xpose.msk.msra.mxu0 %vm1864_vm2, %v1135_v43  ;;  %v1265_v6 = vcombine.high %v1208_v7, %v1240_v30  ;;  %v1336_v29 = vcombine.low %v1277_v55, %v1285_v41  ;;  %v1293_v43 = vpop.permute.xlu0 %1292 }
 0x1ee   :  { %5653 = vmatprep.mubr.msk.f32.mxu1 %vm5987_vm0, %v5986_v1  ;;  %v1337_v52 = vcombine.high %v1277_v55, %v1285_v41  ;;  %v1249_v31 = vcombine.high %v1183_v37, %v1199_v19  ;;  %5658 = vmatprep.mubr.msk.f32.mxu0 %vm5987_vm0, %v5986_v1  ;;  %v1215_v18 = vrot.slane %v1201_v5, %v6115_v27 }
 0x1ef   :  { %5661 = vmatprep.subr.mxu1 %v5986_v1  ;;  %v1247_v47 = vrot.slane %v1233_v20, %v6115_v27  ;;  %v1289_v33 = vpop.permute.xlu1 %1288  ;;  %v1335_v34 = vrot.slane %v1321_v40, %v6101_v22  ;;  %5666 = vmatprep.subr.mxu0 %v5986_v1  ;;  %v1344_v38 = vrot.slane %v1336_v29, %v6101_v22 }
 0x1f0   :  { %5654 = vmatmul.mubr.msk.f32.vlgmr.msra.gmra.mrb[6].mxu1 %vm1864_vm2, %v542_v50  ;;  %v1351_v3 = vrot.slane %v1337_v52, %v6101_v22  ;;  %5659 = vmatmul.mubr.msk.f32.vlgmr.msra.gmra.mrb[10].mxu0 %vm1864_vm2, %v543_v51  ;;  %v1224_v4 = vrot.slane %v1216_v42, %v6115_v27  ;;  %v1256_v8 = vrot.slane %v1248_v39, %v6115_v27 }
 0x1f1   :  { %5662 = vmatpush3.xpose.msk.msra.mxu1 %vm1864_vm2, %v1264_v26  ;;  %v6493_v58 = vrot.slane %v1217_v25, %v6115_v27  ;;  %5667 = vmatpush3.xpose.msk.msra.mxu0 %vm1864_vm2, %v1265_v6  ;;  %v1384_v50 = vcombine.low %v1328_v44, %v1344_v38  ;;  %v1385_v46 = vcombine.high %v1328_v44, %v1344_v38 }
 0x1f2   :  { %v1400_v63 = vcombine.low %v1335_v34, %v1351_v3  ;;  %v1401_v0 = vcombine.high %v1335_v34, %v1351_v3  ;;  %5663 = vmatprep.mubr.msk.f32.mxu1 %vm5987_vm0, %v5986_v1  ;;  %5668 = vmatprep.mubr.msk.f32.mxu0 %vm5987_vm0, %v5986_v1  ;;  %v1266_v48 = vcombine.low %v1215_v18, %v1247_v47 }
 0x1f3   :  { %v1267_v49 = vcombine.high %v1215_v18, %v1247_v47  ;;  %v1297_v51 = vpop.permute.xlu1 %1296  ;;  %v6501_v5 = vrot.slane %v1249_v31, %v6115_v27  ;;  %v1392_v54 = vrot.slane %v1384_v50, %v6115_v27  ;;  %v1399_v21 = vrot.slane %v1385_v46, %v6115_v27  ;;  %5671 = vmatprep.subr.mxu1 %v5986_v1 }
 0x1f4   :  { %v1408_v28 = vrot.slane %v1400_v63, %v6115_v27  ;;  %v1415_v37 = vrot.slane %v1401_v0, %v6115_v27  ;;  %5664 = vmatmul.mubr.msk.f32.vlgmr.msra.gmra.mrb[8].mxu1 %vm1864_vm2, %v672_v17  ;;  %5669 = vmatmul.mubr.msk.f32.vlgmr.msra.gmra.mrb[12].mxu0 %vm1864_vm2, %v673_v23  ;;  %v1268_v19 = vcombine.low %v1224_v4, %v1256_v8 }
 0x1f5   :  { %v1352_v20 = vcombine.low %v1289_v33, %v1297_v51  ;;  %v1353_v2 = vcombine.high %v1289_v33, %v1297_v51  ;;  %v5430_v7 = vcombine.low %v1392_v54, %v1399_v21  ;;  %v5432_v30 = vcombine.high %v1392_v54, %v1399_v21  ;;  %5676 = vmatprep.subr.mxu0 %v5986_v1 }
 0x1f6   :  { %v5434_v41 = vcombine.low %v1408_v28, %v1415_v37  ;;  %v5436_v42 = vcombine.high %v1408_v28, %v1415_v37  ;;  %5672 = vmatpush3.xpose.msk.msra.mxu1 %vm1864_vm2, %v1266_v48  ;;  %5677 = vmatpush3.xpose.msk.msra.mxu0 %vm1864_vm2, %v1267_v49  ;;  %v1269_v17 = vcombine.high %v1224_v4, %v1256_v8 }
 0x1f7   :  { %v1360_v11 = vrot.slane %v1352_v20, %v6101_v22  ;;  %v1270_v12 = vcombine.low %v6493_v58, %v6501_v5  ;;  %v1301_v23 = vpop.permute.xlu1 %1300  ;;  %v1600_v40 = vrot.slane %v5430_v7, %v6101_v22  ;;  %v1616_v44 = vrot.slane %v5432_v30, %v6101_v22  ;;  %5673 = vmatprep.mubr.msk.f32.mxu1 %vm5987_vm0, %v5986_v1 }
 0x1f8   :  { %v1632_v25 = vrot.slane %v5434_v41, %v6101_v22  ;;  %v1648_v39 = vrot.slane %v5436_v42, %v6101_v22  ;;  %5678 = vmatprep.mubr.msk.f32.mxu0 %vm5987_vm0, %v5986_v1  ;;  %5681 = vmatprep.subr.mxu1 %v5986_v1  ;;  %v1367_v55 = vrot.slane %v1353_v2, %v6101_v22 }
 0x1f9   :  { %v1368_v26 = vcombine.low %v1293_v43, %v1301_v23  ;;  %v1369_v6 = vcombine.high %v1293_v43, %v1301_v23  ;;  %5674 = vmatmul.mubr.msk.f32.vlgmr.msra.gmra.mrb[10].mxu1 %vm1864_vm2, %v674_v32  ;;  %5679 = vmatmul.mubr.msk.f32.vlgmr.msra.gmra.mrb[14].mxu0 %vm1864_vm2, %v675_v53  ;;  %v1656_v29 = vcombine.low %v1600_v40, %v1616_v44 }
 0x1fa   :  { %v1688_v52 = vcombine.low %v1632_v25, %v1648_v39  ;;  %v1657_v31 = vcombine.high %v1600_v40, %v1616_v44  ;;  %5686 = vmatprep.subr.mxu0 %v5986_v1  ;;  %5682 = vmatpush3.xpose.msk.msra.mxu1 %vm1864_vm2, %v1268_v19  ;;  %v1689_v33 = vcombine.high %v1632_v25, %v1648_v39 }
 0x1fb   :  { %v1376_v18 = vrot.slane %v1368_v26, %v6101_v22  ;;  %v1383_v47 = vrot.slane %v1369_v6, %v6101_v22  ;;  %5687 = vmatpush3.xpose.msk.msra.mxu0 %vm1864_vm2, %v1269_v17  ;;  %5683 = vmatprep.mubr.msk.f32.mxu1 %vm5987_vm0, %v5986_v1  ;;  %v1271_v13 = vcombine.high %v6493_v58, %v6501_v5 }
 0x1fc   :  { %v1664_v14 = vrot.slane %v1656_v29, %v6115_v27  ;;  %v1696_v32 = vrot.slane %v1688_v52, %v6115_v27  ;;  %5688 = vmatprep.mubr.msk.f32.mxu0 %vm5987_vm0, %v5986_v1  ;;  %5691 = vmatprep.subr.mxu1 %v5986_v1  ;;  %v6560_v8 = vrot.slane %v1657_v31, %v6115_v27 }
 0x1fd   :  { %v1416_v53 = vcombine.low %v1360_v11, %v1376_v18  ;;  %v1417_v34 = vcombine.high %v1360_v11, %v1376_v18  ;;  %v1432_v38 = vcombine.low %v1367_v55, %v1383_v47  ;;  %5684 = vmatmul.mubr.msk.f32.vlgmr.msra.gmra.mrb[12].mxu1 %vm1864_vm2, %v676_v35  ;;  %5696 = vmatprep.subr.mxu0 %v5986_v1 }
 0x1fe   :  { %v1433_v3 = vcombine.high %v1367_v55, %v1383_v47  ;;  %v1720_v4 = vcombine.low %v1664_v14, %v1696_v32  ;;  %5689 = vmatmul.mubr.msk.f32.vlgmr.msra.gmra.mrb[16].mxu0 %vm1864_vm2, %v677_v36  ;;  %5692 = vmatpush3.xpose.msk.msra.mxu1 %vm1864_vm2, %v1270_v12  ;;  %v1721_v63 = vcombine.high %v1664_v14, %v1696_v32 }
 0x1ff   :  { %v1424_v58 = vrot.slane %v1416_v53, %v6115_v27  ;;  %v1431_v50 = vrot.slane %v1417_v34, %v6115_v27  ;;  %v1440_v35 = vrot.slane %v1432_v38, %v6115_v27  ;;  %5697 = vmatpush3.xpose.msk.msra.mxu0 %vm1864_vm2, %v1271_v13  ;;  %5693 = vmatprep.mubr.msk.f32.mxu1 %vm5987_vm0, %v5986_v1 }
 0x200   :  { %v1447_v46 = vrot.slane %v1433_v3, %v6115_v27  ;;  %v6575_v59 = vrot.slane %v1689_v33, %v6115_v27  ;;  %5698 = vmatprep.mubr.msk.f32.mxu0 %vm5987_vm0, %v5986_v1  ;;  %v679_v0 = vcombine.high %v6326_v61, %v6329_v62  ;;  %5701 = vmatprep.subr.mxu1 %v5986_v1 }
 0x201   :  { %v5431_v60 = vcombine.low %v1424_v58, %v1431_v50  ;;  %v5433_v36 = vcombine.high %v1424_v58, %v1431_v50  ;;  %5694 = vmatmul.mubr.msk.f32.vlgmr.msra.gmra.mrb[14].mxu1 %vm1864_vm2, %v678_v24  ;;  %5706 = vmatprep.subr.mxu0 %v5986_v1 }
 0x202   :  { %v5435_v48 = vcombine.low %v1440_v35, %v1447_v46  ;;  %v5437_v49 = vcombine.high %v1440_v35, %v1447_v46  ;;  %v1722_v51 = vcombine.low %v6560_v8, %v6575_v59  ;;  %5699 = vmatmul.mubr.msk.f32.vlgmr.msra.gmra.mrb[18].mxu0 %vm1864_vm2, %v679_v0  ;;  %5702 = vmatpush3.msra.mxu1 %v1720_v4 }
 0x203   :  { %v1607_v5 = vrot.slane %v5431_v60, %v6101_v22  ;;  %v1623_v54 = vrot.slane %v5433_v36, %v6101_v22  ;;  %v1723_v21 = vcombine.high %v6560_v8, %v6575_v59  ;;  %5707 = vmatpush3.msra.mxu0 %v1721_v63  ;;  %5703 = vmatprep.mubr.msk.f32.mxu1 %vm5987_vm0, %v5986_v1 }
 0x204   :  { %v1639_v28 = vrot.slane %v5435_v48, %v6101_v22  ;;  %v1655_v61 = vrot.slane %v5437_v49, %v6101_v22  ;;  %5708 = vmatprep.mubr.msk.f32.mxu0 %vm5987_vm0, %v5986_v1  ;;  %5711 = vmatprep.subr.mxu1 %v5986_v1 }
 0x205   :  { %v1672_v62 = vcombine.low %v1607_v5, %v1623_v54  ;;  %v1673_v24 = vcombine.high %v1607_v5, %v1623_v54  ;;  %5716 = vmatprep.subr.mxu0 %v5986_v1 }
 0x206   :  { %v1704_v37 = vcombine.low %v1639_v28, %v1655_v61  ;;  %v1705_v19 = vcombine.high %v1639_v28, %v1655_v61 }
 0x207   :  { %v6603_v20 = vrot.slane %v1672_v62, %v6115_v27  ;;  %v6606_v2 = vrot.slane %v1673_v24, %v6115_v27 }
 0x208   :  { %v6609_v7 = vrot.slane %v1704_v37, %v6115_v27  ;;  %v6612_v30 = vrot.slane %v1705_v19, %v6115_v27 }
 0x20a   :  { %v1724_v41 = vcombine.low %v6603_v20, %v6609_v7  ;;  %v1725_v42 = vcombine.high %v6603_v20, %v6609_v7  ;;  %v1726_v17 = vcombine.low %v6606_v2, %v6612_v30  ;;  %v1727_v11 = vcombine.high %v6606_v2, %v6612_v30 }
 0x2af   :  { %v6622_v12 = vpop.f32.mrb[4].mxu0 }
 0x2b0   :  { %v6624_v23 = vpop.f32.mrb[0].mxu1  ;;  %v5625_v43 = vpop.f32.mrb[5].mxu0  ;;  %v3082_v40 = vsel %vm3081_vm3, %v6622_v12, -inf }
 0x2b1   :  { %v5630_v44 = vpop.f32.mrb[1].mxu1  ;;  %v3085_v25 = vsel %vm3081_vm3, %v6624_v23, -inf  ;;  %3083 = vmax.xlane.f32.xlu0 %v3082_v40 }
 0x2b2   :  { %3086 = vmax.xlane.f32.xlu1 %v3085_v25 }
 0x2b4   :  { %v6630_v39 = vpop.f32.mrb[2].mxu1 }
 0x2b5   :  { %v5635_v55 = vpop.f32.mrb[3].mxu1  ;;  %v3088_v26 = vsel %vm3081_vm3, %v6630_v39, -inf }
 0x2b6   :  { %v6634_v6 = vpop.f32.mrb[6].mxu0  ;;  %3089 = vmax.xlane.f32.xlu0 %v3088_v26 }
 0x2b7   :  { %v5640_v29 = vpop.f32.mrb[7].mxu0  ;;  %v3091_v52 = vsel %vm3081_vm3, %v6634_v6, -inf }
 0x2b8   :  { %v6694_v29 = vpop.permute.xlu1 %1274 }
 0x2ba   :  { %3092 = vmax.xlane.f32.xlu0 %v3091_v52 }
 0x2be   :  { %v6638_v31 = vpop.f32.mrb[4].mxu1 }
 0x2bf   :  { %v6640_v18 = vpop.f32.mrb[8].mxu0  ;;  %v5645_v47 = vpop.f32.mrb[5].mxu1  ;;  %v3094_v33 = vsel %vm3081_vm3, %v6638_v31, -inf }
 0x2c0   :  { %v5650_v13 = vpop.f32.mrb[9].mxu0  ;;  %3095 = vmax.xlane.f32.xlu1 %v3094_v33  ;;  %v3097_v14 = vsel %vm3081_vm3, %v6640_v18, -inf }
 0x2c1   :  { %3098 = vmax.xlane.f32.xlu0 %v3097_v14 }
 0x2c3   :  { %v6646_v32 = vpop.f32.mrb[6].mxu1  ;;  %v6648_v53 = vpop.f32.mrb[10].mxu0 }
 0x2c4   :  { %v5655_v34 = vpop.f32.mrb[7].mxu1  ;;  %v3100_v38 = vsel %vm3081_vm3, %v6646_v32, -inf  ;;  %v5660_v3 = vpop.f32.mrb[11].mxu0  ;;  %v3103_v4 = vsel %vm3081_vm3, %v6648_v53, -inf }
 0x2c5   :  { %3101 = vmax.xlane.f32.xlu1 %v3100_v38  ;;  %3104 = vmax.xlane.f32.xlu0 %v3103_v4 }
 0x2c7   :  { %v6654_v58 = vpop.f32.mrb[8].mxu1  ;;  %v6656_v50 = vpop.f32.mrb[12].mxu0 }
 0x2c8   :  { %v5665_v35 = vpop.f32.mrb[9].mxu1  ;;  %v3106_v46 = vsel %vm3081_vm3, %v6654_v58, -inf  ;;  %v5670_v63 = vpop.f32.mrb[13].mxu0  ;;  %v3109_v60 = vsel %vm3081_vm3, %v6656_v50, -inf }
 0x2c9   :  { %3107 = vmax.xlane.f32.xlu1 %v3106_v46  ;;  %3110 = vmax.xlane.f32.xlu0 %v3109_v60 }
 0x2cc   :  { %v6662_v36 = vpop.f32.mrb[10].mxu1  ;;  %v6664_v0 = vpop.f32.mrb[14].mxu0 }
 0x2cd   :  { %v5675_v48 = vpop.f32.mrb[11].mxu1  ;;  %v5680_v49 = vpop.f32.mrb[15].mxu0  ;;  %v3112_v5 = vsel %vm3081_vm3, %v6662_v36, -inf  ;;  %v3115_v54 = vsel %vm3081_vm3, %v6664_v0, -inf }
 0x2ce   :  { %3113 = vmax.xlane.f32.xlu1 %v3112_v5  ;;  %3116 = vmax.xlane.f32.xlu0 %v3115_v54 }
 0x2d0   :  { %v6670_v28 = vpop.f32.mrb[12].mxu1 }
 0x2d1   :  { %v6672_v61 = vpop.f32.mrb[16].mxu0  ;;  %v5685_v62 = vpop.f32.mrb[13].mxu1  ;;  %v3118_v24 = vsel %vm3081_vm3, %v6670_v28, -inf }
 0x2d2   :  { %v5690_v37 = vpop.f32.mrb[17].mxu0  ;;  %3119 = vmax.xlane.f32.xlu1 %v3118_v24  ;;  %v3121_v19 = vsel %vm3081_vm3, %v6672_v61, -inf }
 0x2d3   :  { %3122 = vmax.xlane.f32.xlu0 %v3121_v19 }
 0x2d4   :  { %v6678_v43 = vpop.f32.mrb[14].mxu1 }
 0x2d5   :  { %v6680_v40 = vpop.f32.mrb[18].mxu0  ;;  %v5695_v44 = vpop.f32.mrb[15].mxu1  ;;  %v3124_v25 = vsel %vm3081_vm3, %v6678_v43, -inf }
 0x2d6   :  { %v5700_v55 = vpop.f32.mrb[19].mxu0  ;;  %3125 = vmax.xlane.f32.xlu1 %v3124_v25  ;;  %v3127_v26 = vsel %vm3081_vm3, %v6680_v40, -inf }
 0x2d7   :  { %3128 = vmax.xlane.f32.xlu0 %v3127_v26 }
 0x2e7   :  { %1282 = vrot.lane.b32.xlu1 %v6153_v56, %s5998_s16 }
 0x2eb   :  { %1286 = vrot.lane.b32.xlu1 %v6155_v57, %s5998_s16 }
 0x2ed   :  { %1278 = vrot.lane.b32.xlu0 %v6139_v45, %s5998_s16 }
 0x2ef   :  { %1290 = vrot.lane.b32.xlu1 %v6167_v9, %s5998_s16 }
 0x33e   :  { %v3084_v52 = vpop.xlane.xlu0 %3083 }
 0x33f   :  { %v3087_v47 = vpop.xlane.xlu1 %3086  ;;  %v3130_v33 = vsub.f32 %v6622_v12, %v3084_v52 }
 0x340   :  { %v3131_v13 = vsub.f32 %v6624_v23, %v3087_v47 }
 0x341   :  { %v3146_v14 = vmul.f32 1.442695, %v3130_v33 }
 0x342   :  { %v3148_v34 = vmul.f32 1.442695, %v3131_v13 }
 0x343   :  { %5888 = vpow2.f32 %v3146_v14  ;;  %v3090_v56 = vpop.xlane.xlu0 %3089 }
 0x344   :  { %5890 = vpow2.f32 %v3148_v34  ;;  %v3132_v57 = vsub.f32 %v6630_v39, %v3090_v56 }
 0x346   :  { %v3150_v38 = vmul.f32 1.442695, %v3132_v57 }
 0x347   :  { %v3093_v45 = vpop.xlane.xlu0 %3092 }
 0x348   :  { %5892 = vpow2.f32 %v3150_v38  ;;  %v3133_v9 = vsub.f32 %v6634_v6, %v3093_v45 }
 0x34a   :  { %v3152_v3 = vmul.f32 1.442695, %v3133_v9 }
 0x34c   :  { %5894 = vpow2.f32 %v3152_v3 }
 0x34d   :  { %v6700_v4 = vpop.eup %5888  ;;  %v3096_v12 = vpop.xlane.xlu1 %3095 }
 0x34e   :  { %v6702_v35 = vpop.eup %5890  ;;  %v3178_v23 = vsel %vm3081_vm3, %v6700_v4, 0.0  ;;  %v3134_v46 = vsub.f32 %v6638_v31, %v3096_v12  ;;  %v3099_v63 = vpop.xlane.xlu0 %3098 }
 0x34f   :  { %3179 = vadd.xlane.f32.xlu1 %v3178_v23  ;;  %v3181_v39 = vsel %vm3081_vm3, %v6702_v35, 0.0  ;;  %v3135_v60 = vsub.f32 %v6640_v18, %v3099_v63 }
 0x350   :  { %3182 = vadd.xlane.f32.xlu0 %v3181_v39  ;;  %v3154_v6 = vmul.f32 1.442695, %v3134_v46 }
 0x351   :  { %v3156_v5 = vmul.f32 1.442695, %v3135_v60 }
 0x352   :  { %v6710_v48 = vpop.eup %5892  ;;  %v3102_v49 = vpop.xlane.xlu1 %3101  ;;  %5896 = vpow2.f32 %v3154_v6 }
 0x353   :  { %v3136_v54 = vsub.f32 %v6646_v32, %v3102_v49  ;;  %v3105_v62 = vpop.xlane.xlu0 %3104  ;;  %v3184_v31 = vsel %vm3081_vm3, %v6710_v48, 0.0  ;;  %5898 = vpow2.f32 %v3156_v5 }
 0x354   :  { %v3137_v24 = vsub.f32 %v6648_v53, %v3105_v62  ;;  %3185 = vadd.xlane.f32.xlu1 %v3184_v31 }
 0x355   :  { %v3158_v37 = vmul.f32 1.442695, %v3136_v54 }
 0x356   :  { %v6716_v19 = vpop.eup %5894  ;;  %v3108_v18 = vpop.xlane.xlu1 %3107  ;;  %v3160_v44 = vmul.f32 1.442695, %v3137_v24 }
 0x357   :  { %5900 = vpow2.f32 %v3158_v37  ;;  %v3138_v25 = vsub.f32 %v6654_v58, %v3108_v18  ;;  %v3111_v55 = vpop.xlane.xlu0 %3110  ;;  %v3187_v32 = vsel %vm3081_vm3, %v6716_v19, 0.0 }
 0x358   :  { %v3139_v26 = vsub.f32 %v6656_v50, %v3111_v55  ;;  %3188 = vadd.xlane.f32.xlu0 %v3187_v32  ;;  %5902 = vpow2.f32 %v3160_v44 }
 0x359   :  { %v3162_v52 = vmul.f32 1.442695, %v3138_v25 }
 0x35a   :  { %v3164_v47 = vmul.f32 1.442695, %v3139_v26 }
 0x35b   :  { %v3114_v53 = vpop.xlane.xlu1 %3113  ;;  %v3117_v33 = vpop.xlane.xlu0 %3116 }
 0x35c   :  { %5904 = vpow2.f32 %v3164_v47  ;;  %v6722_v13 = vpop.eup %5896  ;;  %v3140_v14 = vsub.f32 %v6662_v36, %v3114_v53  ;;  %v3141_v58 = vsub.f32 %v6664_v0, %v3117_v33 }
 0x35d   :  { %5906 = vpow2.f32 %v3162_v52  ;;  %v6726_v34 = vpop.eup %5898  ;;  %v3190_v56 = vsel %vm3081_vm3, %v6722_v13, 0.0 }
 0x35e   :  { %v3166_v50 = vmul.f32 1.442695, %v3140_v14  ;;  %v3193_v57 = vsel %vm3081_vm3, %v6726_v34, 0.0  ;;  %3191 = vadd.xlane.f32.xlu0 %v3190_v56  ;;  %v3168_v9 = vmul.f32 1.442695, %v3141_v58 }
 0x35f   :  { %v3120_v38 = vpop.xlane.xlu1 %3119  ;;  %3194 = vadd.xlane.f32.xlu1 %v3193_v57 }
 0x360   :  { %5908 = vpow2.f32 %v3166_v50  ;;  %v3123_v3 = vpop.xlane.xlu0 %3122  ;;  %v3142_v36 = vsub.f32 %v6670_v28, %v3120_v38 }
 0x361   :  { %v6732_v45 = vpop.eup %5900  ;;  %v3143_v0 = vsub.f32 %v6672_v61, %v3123_v3  ;;  %5910 = vpow2.f32 %v3168_v9 }
 0x362   :  { %v3196_v12 = vsel %vm3081_vm3, %v6732_v45, 0.0  ;;  %v6738_v23 = vpop.eup %5902  ;;  %v3170_v60 = vmul.f32 1.442695, %v3142_v36 }
 0x363   :  { %3197 = vadd.xlane.f32.xlu0 %v3196_v12  ;;  %v3126_v46 = vpop.xlane.xlu1 %3125  ;;  %v3172_v63 = vmul.f32 1.442695, %v3143_v0  ;;  %v3199_v28 = vsel %vm3081_vm3, %v6738_v23, 0.0 }
 0x364   :  { %v3144_v6 = vsub.f32 %v6678_v43, %v3126_v46  ;;  %v3129_v61 = vpop.xlane.xlu0 %3128 }
 0x365   :  { %5912 = vpow2.f32 %v3172_v63  ;;  %v3145_v62 = vsub.f32 %v6680_v40, %v3129_v61 }
 0x366   :  { %v6740_v39 = vpop.eup %5904  ;;  %5914 = vpow2.f32 %v3170_v60  ;;  %v3174_v54 = vmul.f32 1.442695, %v3144_v6 }
 0x367   :  { %v6745_v49 = vpop.eup %5906  ;;  %v3205_v5 = vsel %vm3081_vm3, %v6740_v39, 0.0  ;;  %3200 = vadd.xlane.f32.xlu0 %v3199_v28  ;;  %v3176_v24 = vmul.f32 1.442695, %v3145_v62  ;;  %v1283_v33 = vpop.permute.xlu1 %1282 }
 0x368   :  { %3206 = vadd.xlane.f32.xlu1 %v3205_v5  ;;  %v3202_v31 = vsel %vm3081_vm3, %v6745_v49, 0.0  ;;  %5916 = vpow2.f32 %v3174_v54  ;;  %v1279_v56 = vpop.permute.xlu0 %1278  ;;  %v1456_v3 = vcombine.low %v6694_v29, %v1283_v33 }
 0x369   :  { %5918 = vpow2.f32 %v3176_v24 }
 0x36a   :  { %v6752_v43 = vpop.eup %5908  ;;  %v1464_v0 = vrot.slane %v1456_v3, %v6101_v22 }
 0x36b   :  { %3203 = vadd.xlane.f32.xlu0 %v3202_v31  ;;  %v3208_v37 = vsel %vm3081_vm3, %v6752_v43, 0.0  ;;  %v6756_v18 = vpop.eup %5910  ;;  %v1287_v14 = vpop.permute.xlu1 %1286 }
 0x36c   :  { %v3211_v25 = vsel %vm3081_vm3, %v6756_v18, 0.0  ;;  %v1472_v50 = vcombine.low %v1279_v56, %v1287_v14  ;;  %v1473_v38 = vcombine.high %v1279_v56, %v1287_v14 }
 0x36e   :  { %v1487_v36 = vrot.slane %v1473_v38, %v6101_v22 }
 0x36f   :  { %3209 = vadd.xlane.f32.xlu0 %v3208_v37  ;;  %v6758_v44 = vpop.eup %5912  ;;  %v6782_v58 = vpop.permute.xlu1 %1290 }
 0x370   :  { %v3217_v40 = vsel %vm3081_vm3, %v6758_v44, 0.0  ;;  %v6764_v55 = vpop.eup %5914 }
 0x371   :  { %3218 = vadd.xlane.f32.xlu1 %v3217_v40  ;;  %v3214_v32 = vsel %vm3081_vm3, %v6764_v55, 0.0 }
 0x372   :  { %v6768_v26 = vpop.eup %5916 }
 0x373   :  { %3212 = vadd.xlane.f32.xlu0 %v3211_v25  ;;  %v3220_v52 = vsel %vm3081_vm3, %v6768_v26, 0.0  ;;  %v6772_v47 = vpop.eup %5918 }
 0x374   :  { %v3223_v53 = vsel %vm3081_vm3, %v6772_v47, 0.0 }
 0x377   :  { %3215 = vadd.xlane.f32.xlu0 %v3214_v32 }
 0x37b   :  { %3221 = vadd.xlane.f32.xlu0 %v3220_v52 }
 0x37f   :  { %3224 = vadd.xlane.f32.xlu0 %v3223_v53 }
 0x382   :  { %1298 = vrot.lane.b32.xlu1 %v6181_v15, %s5998_s16  ;;  %v1457_v15 = vcombine.high %v6694_v29, %v1283_v33 }
 0x384   :  { %v1471_v12 = vrot.slane %v1457_v15, %v6101_v22 }
 0x386   :  { %1302 = vrot.lane.b32.xlu1 %v6183_v16, %s5998_s16  ;;  %v1480_v16 = vrot.slane %v1472_v50, %v6101_v22  ;;  %v1536_v60 = vcombine.low %v1471_v12, %v1487_v36  ;;  %v1537_v6 = vcombine.high %v1471_v12, %v1487_v36 }
 0x388   :  { %v1520_v46 = vcombine.low %v1464_v0, %v1480_v16  ;;  %v1521_v63 = vcombine.high %v1464_v0, %v1480_v16  ;;  %v1544_v31 = vrot.slane %v1536_v60, %v6115_v27  ;;  %v1551_v24 = vrot.slane %v1537_v6, %v6115_v27 }
 0x38a   :  { %v1528_v29 = vrot.slane %v1520_v46, %v6115_v27  ;;  %v1535_v54 = vrot.slane %v1521_v63, %v6115_v27 }
 0x38c   :  { %v5438_v25 = vcombine.low %v1528_v29, %v1535_v54  ;;  %v5440_v32 = vcombine.high %v1528_v29, %v1535_v54 }
 0x38e   :  { %v1736_v59 = vrot.slane %v5438_v25, %v6101_v22 }
 0x395   :  { %1294 = vrot.lane.b32.xlu0 %v6171_v10, %s5998_s16 }
 0x3dc   :  { %v3180_v57 = vpop.xlane.xlu1 %3179 }
 0x3dd   :  { %5920 = vrcp.f32 %v3180_v57  ;;  %v3183_v9 = vpop.xlane.xlu0 %3182 }
 0x3de   :  { %5922 = vrcp.f32 %v3183_v9 }
 0x3e1   :  { %v3186_v10 = vpop.xlane.xlu1 %3185 }
 0x3e2   :  { %5924 = vrcp.f32 %v3186_v10 }
 0x3e5   :  { %v3189_v28 = vpop.xlane.xlu0 %3188 }
 0x3e6   :  { %5926 = vrcp.f32 %v3189_v28 }
 0x3e7   :  { %v5921_v61 = vpop.eup %5920 }
 0x3e8   :  { %v5923_v5 = vpop.eup %5922  ;;  %v3242_v62 = vmul.f32 %v5921_v61, %v6700_v4  ;;  %v5442_v4 = vcombine.low %v1544_v31, %v1551_v24 }
 0x3e9   :  { %v3243_v37 = vmul.f32 %v5923_v5, %v6702_v35  ;;  %v5444_v35 = vcombine.high %v1544_v31, %v1551_v24 }
 0x3ea   :  { %5704 = vmatmul.mubr.msk.f32.vlgmr.msra.gmra.mrb[16].mxu1 %vm3081_vm3, %v3242_v62 }
 0x3eb   :  { %5709 = vmatmul.mubr.msk.f32.vlgmr.msra.gmra.mrb[20].mxu0 %vm3081_vm3, %v3243_v37  ;;  %5712 = vmatpush3.msra.mxu1 %v1722_v51  ;;  %v3192_v52 = vpop.xlane.xlu0 %3191  ;;  %v1752_v51 = vrot.slane %v5440_v32, %v6101_v22  ;;  %v1784_v14 = vrot.slane %v5444_v35, %v6101_v22 }
 0x3ec   :  { %v5925_v40 = vpop.eup %5924  ;;  %5717 = vmatpush3.msra.mxu0 %v1723_v21  ;;  %5713 = vmatprep.mubr.msk.f32.mxu1 %vm5987_vm0, %v5986_v1  ;;  %v3195_v33 = vpop.xlane.xlu1 %3194  ;;  %5928 = vrcp.f32 %v3192_v52 }
 0x3ed   :  { %v3244_v53 = vmul.f32 %v5925_v40, %v6710_v48  ;;  %5721 = vmatprep.subr.mxu1 %v5986_v1  ;;  %5718 = vmatprep.mubr.msk.f32.mxu0 %vm5987_vm0, %v5986_v1  ;;  %5930 = vrcp.f32 %v3195_v33  ;;  %v1768_v48 = vrot.slane %v5442_v4, %v6101_v22  ;;  %v1792_v57 = vcombine.low %v1736_v59, %v1752_v51 }
 0x3ee   :  { %5726 = vmatprep.subr.mxu0 %v5986_v1  ;;  %v1793_v10 = vcombine.high %v1736_v59, %v1752_v51 }
 0x3ef   :  { %5714 = vmatmul.mubr.msk.f32.vlgmr.msra.gmra.mrb[18].mxu1 %vm3081_vm3, %v3244_v53  ;;  %v1824_v38 = vcombine.low %v1768_v48, %v1784_v14  ;;  %v1800_v20 = vrot.slane %v1792_v57, %v6115_v27  ;;  %v1825_v0 = vcombine.high %v1768_v48, %v1784_v14 }
 0x3f0   :  { %v5927_v8 = vpop.eup %5926  ;;  %v3198_v21 = vpop.xlane.xlu0 %3197  ;;  %5722 = vmatpush3.msra.mxu1 %v1724_v41  ;;  %5723 = vmatprep.mubr.msk.f32.mxu1 %vm5987_vm0, %v5986_v1  ;;  %v1807_v12 = vrot.slane %v1793_v10, %v6115_v27 }
 0x3f1   :  { %v3245_v56 = vmul.f32 %v5927_v8, %v6716_v19  ;;  %5932 = vrcp.f32 %v3198_v21  ;;  %5731 = vmatprep.subr.mxu1 %v5986_v1  ;;  %v1832_v7 = vrot.slane %v1824_v38, %v6115_v27  ;;  %v1839_v46 = vrot.slane %v1825_v0, %v6115_v27 }
 0x3f3   :  { %5719 = vmatmul.mubr.msk.f32.vlgmr.msra.gmra.mrb[22].mxu0 %vm3081_vm3, %v3245_v56  ;;  %v1858_v61 = vcombine.low %v1807_v12, %v1839_v46  ;;  %v1859_v5 = vcombine.high %v1807_v12, %v1839_v46 }
 0x3f4   :  { %v3201_v50 = vpop.xlane.xlu0 %3200  ;;  %5727 = vmatpush3.msra.mxu0 %v1725_v42  ;;  %5728 = vmatprep.mubr.msk.f32.mxu0 %vm5987_vm0, %v5986_v1 }
 0x3f5   :  { %v3207_v41 = vpop.xlane.xlu1 %3206  ;;  %5934 = vrcp.f32 %v3201_v50  ;;  %5736 = vmatprep.subr.mxu0 %v5986_v1 }
 0x3f6   :  { %v5929_v19 = vpop.eup %5928  ;;  %5936 = vrcp.f32 %v3207_v41 }
 0x3f7   :  { %v5931_v9 = vpop.eup %5930  ;;  %v3246_v3 = vmul.f32 %v5929_v19, %v6722_v13 }
 0x3f8   :  { %v3204_v15 = vpop.xlane.xlu0 %3203  ;;  %v3247_v16 = vmul.f32 %v5931_v9, %v6726_v34  ;;  %v1856_v34 = vcombine.low %v1800_v20, %v1832_v7 }
 0x3f9   :  { %5938 = vrcp.f32 %v3204_v15  ;;  %5724 = vmatmul.mubr.msk.f32.vlgmr.msra.gmra.mrb[20].mxu1 %vm3081_vm3, %v3246_v3 }
 0x3fa   :  { %5729 = vmatmul.mubr.msk.f32.vlgmr.msra.gmra.mrb[24].mxu0 %vm3081_vm3, %v3247_v16  ;;  %5732 = vmatpush3.msra.mxu1 %v1726_v17 }
 0x3fb   :  { %v5933_v42 = vpop.eup %5932  ;;  %5737 = vmatpush3.msra.mxu0 %v1727_v11  ;;  %5733 = vmatprep.mubr.msk.f32.mxu1 %vm5987_vm0, %v5986_v1 }
 0x3fc   :  { %v3248_v36 = vmul.f32 %v5933_v42, %v6732_v45  ;;  %v3210_v13 = vpop.xlane.xlu0 %3209  ;;  %5741 = vmatprep.subr.mxu1 %v5986_v1  ;;  %5738 = vmatprep.mubr.msk.f32.mxu0 %vm5987_vm0, %v5986_v1  ;;  %v1857_v45 = vcombine.high %v1800_v20, %v1832_v7 }
 0x3fd   :  { %5940 = vrcp.f32 %v3210_v13  ;;  %5746 = vmatprep.subr.mxu0 %v5986_v1 }
 0x3fe   :  { %5734 = vmatmul.mubr.msk.f32.vlgmr.msra.gmra.mrb[22].mxu1 %vm3081_vm3, %v3248_v36  ;;  %v3219_v6 = vpop.xlane.xlu1 %3218 }
 0x3ff   :  { %v5935_v17 = vpop.eup %5934  ;;  %5742 = vmatpush3.msra.mxu1 %v1856_v34  ;;  %5743 = vmatprep.mubr.msk.f32.mxu1 %vm5987_vm0, %v5986_v1 }
 0x400   :  { %v3249_v2 = vmul.f32 %v5935_v17, %v6738_v23  ;;  %5751 = vmatprep.subr.mxu1 %v5986_v1  ;;  %v5937_v30 = vpop.eup %5936  ;;  %v3213_v11 = vpop.xlane.xlu0 %3212 }
 0x401   :  { %5942 = vrcp.f32 %v3213_v11  ;;  %v3251_v60 = vmul.f32 %v5937_v30, %v6740_v39 }
 0x402   :  { %5739 = vmatmul.mubr.msk.f32.vlgmr.msra.gmra.mrb[26].mxu0 %vm3081_vm3, %v3249_v2  ;;  %5944 = vrcp.f32 %v3219_v6 }
 0x403   :  { %v5939_v63 = vpop.eup %5938  ;;  %5747 = vmatpush3.msra.mxu0 %v1857_v45  ;;  %5748 = vmatprep.mubr.msk.f32.mxu0 %vm5987_vm0, %v5986_v1 }
 0x404   :  { %v3250_v23 = vmul.f32 %v5939_v63, %v6745_v49  ;;  %5756 = vmatprep.subr.mxu0 %v5986_v1  ;;  %v3216_v28 = vpop.xlane.xlu0 %3215  ;;  %v1299_v49 = vpop.permute.xlu1 %1298 }
 0x405   :  { %v1488_v24 = vcombine.low %v6782_v58, %v1299_v49  ;;  %v1489_v37 = vcombine.high %v6782_v58, %v1299_v49  ;;  %5946 = vrcp.f32 %v3216_v28 }
 0x406   :  { %5744 = vmatmul.mubr.msk.f32.vlgmr.msra.gmra.mrb[24].mxu1 %vm3081_vm3, %v3250_v23  ;;  %5749 = vmatmul.mubr.msk.f32.vlgmr.msra.gmra.mrb[28].mxu0 %vm3081_vm3, %v3251_v60 }
 0x407   :  { %v5941_v29 = vpop.eup %5940  ;;  %5752 = vmatpush3.msra.mxu1 %v1858_v61  ;;  %5757 = vmatpush3.msra.mxu0 %v1859_v5  ;;  %v1496_v4 = vrot.slane %v1488_v24, %v6101_v22  ;;  %v1503_v35 = vrot.slane %v1489_v37, %v6101_v22 }
 0x408   :  { %v3252_v54 = vmul.f32 %v5941_v29, %v6752_v43  ;;  %5753 = vmatprep.mubr.msk.f32.mxu1 %vm5987_vm0, %v5986_v1  ;;  %5758 = vmatprep.mubr.msk.f32.mxu0 %vm5987_vm0, %v5986_v1  ;;  %v3222_v39 = vpop.xlane.xlu0 %3221  ;;  %v1303_v40 = vpop.permute.xlu1 %1302 }
 0x409   :  { %5761 = vmatprep.subr.mxu1 %v5986_v1  ;;  %5766 = vmatprep.subr.mxu0 %v5986_v1  ;;  %5948 = vrcp.f32 %v3222_v39 }
 0x40a   :  { %5754 = vmatmul.mubr.msk.f32.vlgmr.msra.gmra.mrb[26].mxu1 %vm3081_vm3, %v3252_v54 }
 0x40b   :  { %5763 = vmatprep.mubr.msk.f32.mxu1 %vm5987_vm0, %v5986_v1  ;;  %v5943_v62 = vpop.eup %5942 }
 0x40c   :  { %v3253_v43 = vmul.f32 %v5943_v62, %v6756_v18  ;;  %v3225_v31 = vpop.xlane.xlu0 %3224  ;;  %v5945_v15 = vpop.eup %5944 }
 0x40d   :  { %5950 = vrcp.f32 %v3225_v31  ;;  %v3255_v45 = vmul.f32 %v5945_v15, %v6758_v44 }
 0x40e   :  { %5759 = vmatmul.mubr.msk.f32.vlgmr.msra.gmra.mrb[30].mxu0 %vm3081_vm3, %v3253_v43 }
 0x40f   :  { %5768 = vmatprep.mubr.msk.f32.mxu0 %vm5987_vm0, %v5986_v1  ;;  %v5947_v36 = vpop.eup %5946 }
 0x410   :  { %v1295_v25 = vpop.permute.xlu0 %1294  ;;  %v3254_v12 = vmul.f32 %v5947_v36, %v6764_v55 }
 0x411   :  { %v1504_v32 = vcombine.low %v1295_v25, %v1303_v40  ;;  %v1505_v52 = vcombine.high %v1295_v25, %v1303_v40 }
 0x413   :  { %v1512_v18 = vrot.slane %v1504_v32, %v6101_v22  ;;  %v1519_v53 = vrot.slane %v1505_v52, %v6101_v22  ;;  %v5949_v10 = vpop.eup %5948 }
 0x414   :  { %v3256_v60 = vmul.f32 %v5949_v10, %v6768_v26 }
 0x415   :  { %v1552_v33 = vcombine.low %v1496_v4, %v1512_v18  ;;  %v1553_v8 = vcombine.high %v1496_v4, %v1512_v18  ;;  %v1568_v58 = vcombine.low %v1503_v35, %v1519_v53  ;;  %v1569_v59 = vcombine.high %v1503_v35, %v1519_v53 }
 0x417   :  { %v1560_v51 = vrot.slane %v1552_v33, %v6115_v27  ;;  %v1567_v21 = vrot.slane %v1553_v8, %v6115_v27  ;;  %v1576_v48 = vrot.slane %v1568_v58, %v6115_v27  ;;  %v1583_v14 = vrot.slane %v1569_v59, %v6115_v27  ;;  %v5951_v11 = vpop.eup %5950 }
 0x418   :  { %v3257_v23 = vmul.f32 %v5951_v11, %v6772_v47 }
 0x419   :  { %v5439_v56 = vcombine.low %v1560_v51, %v1567_v21  ;;  %v5441_v50 = vcombine.high %v1560_v51, %v1567_v21  ;;  %v5443_v41 = vcombine.low %v1576_v48, %v1583_v14  ;;  %v5445_v57 = vcombine.high %v1576_v48, %v1583_v14 }
 0x41b   :  { %v1743_v38 = vrot.slane %v5439_v56, %v6101_v22  ;;  %v1759_v19 = vrot.slane %v5441_v50, %v6101_v22  ;;  %v1775_v9 = vrot.slane %v5443_v41, %v6101_v22  ;;  %v1791_v3 = vrot.slane %v5445_v57, %v6101_v22 }
 0x41d   :  { %v1808_v16 = vcombine.low %v1743_v38, %v1759_v19  ;;  %v1840_v20 = vcombine.low %v1775_v9, %v1791_v3  ;;  %v1809_v7 = vcombine.high %v1743_v38, %v1759_v19  ;;  %v1841_v42 = vcombine.high %v1775_v9, %v1791_v3 }
 0x41f   :  { %v1816_v13 = vrot.slane %v1808_v16, %v6115_v27  ;;  %v1848_v34 = vrot.slane %v1840_v20, %v6115_v27  ;;  %v1823_v0 = vrot.slane %v1809_v7, %v6115_v27  ;;  %v1855_v17 = vrot.slane %v1841_v42, %v6115_v27 }
 0x421   :  { %v1860_v2 = vcombine.low %v1816_v13, %v1848_v34  ;;  %v1861_v30 = vcombine.high %v1816_v13, %v1848_v34  ;;  %v1862_v46 = vcombine.low %v1823_v0, %v1855_v17  ;;  %v1863_v63 = vcombine.high %v1823_v0, %v1855_v17 }
 0x423   :  { %5762 = vmatpush3.msra.mxu1 %v1860_v2  ;;  %5767 = vmatpush3.msra.mxu0 %v1861_v30 }
 0x424   :  { %5764 = vmatmul.mubr.msk.f32.vlgmr.msra.gmra.mrb[28].mxu1 %vm3081_vm3, %v3254_v12  ;;  %5769 = vmatmul.mubr.msk.f32.vlgmr.msra.gmra.mrb[32].mxu0 %vm3081_vm3, %v3255_v45 }
 0x425   :  { %5771 = vmatprep.subr.mxu1 %v5986_v1  ;;  %5776 = vmatprep.subr.mxu0 %v5986_v1 }
 0x426   :  { %5772 = vmatpush3.msra.mxu1 %v1862_v46  ;;  %5777 = vmatpush3.msra.mxu0 %v1863_v63 }
 0x427   :  { %5773 = vmatprep.mubr.msk.f32.mxu1 %vm5987_vm0, %v5986_v1  ;;  %5778 = vmatprep.mubr.msk.f32.mxu0 %vm5987_vm0, %v5986_v1 }
 0x428   :  { %5774 = vmatmul.mubr.msk.f32.vlgmr.msra.gmra.mrb[30].mxu1 %vm3081_vm3, %v3256_v60  ;;  %5779 = vmatmul.mubr.msk.f32.vlgmr.msra.gmra.mrb[34].mxu0 %vm3081_vm3, %v3257_v23 }
 0x429   :  { %5781 = vmatprep.subr.bf16.mxu0 %v5986_v1  ;;  %5785 = vmatprep.mubr.msk.bf16.mxu0 %vm5987_vm0, %v5986_v1 }
 0x42a   :  { %5797 = vmatprep.subr.bf16.mxu1 %v5986_v1  ;;  %5813 = vmatprep.mubr.msk.bf16.mxu1 %vm5987_vm0, %v5986_v1 }
 0x4bd   :  { %v3327_v44 = vpop.f32.mrb[16].mxu1 }
 0x4be   :  { %v3400_v55 = vpop.f32.mrb[20].mxu0  ;;  %v5705_v26 = vpop.f32.mrb[17].mxu1 }
 0x4bf   :  { %v5710_v47 = vpop.f32.mrb[21].mxu0 }
 0x4c2   :  { %v3473_v6 = vpop.f32.mrb[18].mxu1 }
 0x4c3   :  { %v4426_v28 = vcombine.low %v3327_v44, %v3473_v6  ;;  %v4427_v61 = vcombine.high %v3327_v44, %v3473_v6  ;;  %v5715_v5 = vpop.f32.mrb[19].mxu1 }
 0x4c5   :  { %v4434_v62 = vrot.slane %v4426_v28, %v6101_v22  ;;  %v4441_v43 = vrot.slane %v4427_v61, %v6101_v22 }
 0x4c6   :  { %v3546_v29 = vpop.f32.mrb[22].mxu0 }
 0x4c7   :  { %v4442_v54 = vcombine.low %v3400_v55, %v3546_v29  ;;  %v4443_v39 = vcombine.high %v3400_v55, %v3546_v29  ;;  %v5720_v49 = vpop.f32.mrb[23].mxu0 }
 0x4c9   :  { %v4450_v31 = vrot.slane %v4442_v54, %v6101_v22  ;;  %v4457_v24 = vrot.slane %v4443_v39, %v6101_v22 }
 0x4cb   :  { %v4490_v37 = vcombine.low %v4434_v62, %v4450_v31  ;;  %v4491_v40 = vcombine.high %v4434_v62, %v4450_v31  ;;  %v4506_v25 = vcombine.low %v4441_v43, %v4457_v24  ;;  %v4507_v32 = vcombine.high %v4441_v43, %v4457_v24 }
 0x4cc   :  { %v3619_v53 = vpop.f32.mrb[20].mxu1 }
 0x4cd   :  { %v4498_v52 = vrot.slane %v4490_v37, %v6115_v27  ;;  %v4505_v4 = vrot.slane %v4491_v40, %v6115_v27  ;;  %v4514_v35 = vrot.slane %v4506_v25, %v6115_v27  ;;  %v4521_v18 = vrot.slane %v4507_v32, %v6115_v27  ;;  %v3692_v33 = vpop.f32.mrb[24].mxu0  ;;  %v5725_v8 = vpop.f32.mrb[21].mxu1 }
 0x4ce   :  { %v5730_v48 = vpop.f32.mrb[25].mxu0 }
 0x4cf   :  { %v5494_v58 = vcombine.low %v4498_v52, %v4505_v4  ;;  %v5496_v59 = vcombine.high %v4498_v52, %v4505_v4  ;;  %v5498_v51 = vcombine.low %v4514_v35, %v4521_v18  ;;  %v5500_v21 = vcombine.high %v4514_v35, %v4521_v18 }
 0x4d1   :  { %v4706_v14 = vrot.slane %v5494_v58, %v6101_v22  ;;  %v4722_v56 = vrot.slane %v5496_v59, %v6101_v22  ;;  %v4738_v50 = vrot.slane %v5498_v51, %v6101_v22  ;;  %v4754_v41 = vrot.slane %v5500_v21, %v6101_v22  ;;  %v3765_v57 = vpop.f32.mrb[22].mxu1 }
 0x4d2   :  { %v4458_v38 = vcombine.low %v3619_v53, %v3765_v57  ;;  %v4459_v19 = vcombine.high %v3619_v53, %v3765_v57  ;;  %v5735_v9 = vpop.f32.mrb[23].mxu1 }
 0x4d3   :  { %v4763_v3 = vcombine.high %v4706_v14, %v4722_v56  ;;  %v4795_v15 = vcombine.high %v4738_v50, %v4754_v41  ;;  %v4762_v16 = vcombine.low %v4706_v14, %v4722_v56  ;;  %v4794_v20 = vcombine.low %v4738_v50, %v4754_v41 }
 0x4d4   :  { %v4466_v12 = vrot.slane %v4458_v38, %v6101_v22  ;;  %v4473_v46 = vrot.slane %v4459_v19, %v6101_v22 }
 0x4d5   :  { %v3838_v7 = vpop.f32.mrb[26].mxu0  ;;  %v6929_v42 = vrot.slane %v4763_v3, %v6115_v27  ;;  %v6932_v36 = vrot.slane %v4795_v15, %v6115_v27  ;;  %v6935_v13 = vrot.slane %v4762_v16, %v6115_v27  ;;  %v6938_v34 = vrot.slane %v4794_v20, %v6115_v27 }
 0x4d6   :  { %v4474_v10 = vcombine.low %v3692_v33, %v3838_v7  ;;  %v4475_v0 = vcombine.high %v3692_v33, %v3838_v7  ;;  %v5740_v17 = vpop.f32.mrb[27].mxu0 }
 0x4d7   :  { %v4828_v2 = vcombine.low %v6929_v42, %v6932_v36  ;;  %v4826_v30 = vcombine.low %v6935_v13, %v6938_v34  ;;  %v4827_v11 = vcombine.high %v6935_v13, %v6938_v34  ;;  %v4829_v45 = vcombine.high %v6929_v42, %v6932_v36 }
 0x4d8   :  { %v4482_v63 = vrot.slane %v4474_v10, %v6101_v22  ;;  %v4489_v60 = vrot.slane %v4475_v0, %v6101_v22 }
 0x4d9   :  { %v3911_v23 = vpop.f32.mrb[24].mxu1  ;;  %v3984_v44 = vpop.f32.mrb[28].mxu0 }
 0x4da   :  { %v4522_v55 = vcombine.low %v4466_v12, %v4482_v63  ;;  %v4523_v26 = vcombine.high %v4466_v12, %v4482_v63  ;;  %v4538_v47 = vcombine.low %v4473_v46, %v4489_v60  ;;  %v4539_v6 = vcombine.high %v4473_v46, %v4489_v60  ;;  %v5745_v28 = vpop.f32.mrb[25].mxu1  ;;  %v5750_v61 = vpop.f32.mrb[29].mxu0 }
 0x4dc   :  { %v4530_v5 = vrot.slane %v4522_v55, %v6115_v27  ;;  %v4537_v29 = vrot.slane %v4523_v26, %v6115_v27  ;;  %v4546_v54 = vrot.slane %v4538_v47, %v6115_v27  ;;  %v4553_v39 = vrot.slane %v4539_v6, %v6115_v27 }
 0x4dd   :  { %v4057_v49 = vpop.f32.mrb[26].mxu1 }
 0x4de   :  { %v5495_v62 = vcombine.low %v4530_v5, %v4537_v29  ;;  %v5497_v43 = vcombine.high %v4530_v5, %v4537_v29  ;;  %v5499_v31 = vcombine.low %v4546_v54, %v4553_v39  ;;  %v5501_v24 = vcombine.high %v4546_v54, %v4553_v39  ;;  %v5755_v37 = vpop.f32.mrb[27].mxu1 }
 0x4df   :  { %v4562_v40 = vcombine.low %v3911_v23, %v4057_v49  ;;  %v4563_v25 = vcombine.high %v3911_v23, %v4057_v49 }
 0x4e0   :  { %v4713_v32 = vrot.slane %v5495_v62, %v6101_v22  ;;  %v4729_v52 = vrot.slane %v5497_v43, %v6101_v22  ;;  %v4745_v4 = vrot.slane %v5499_v31, %v6101_v22  ;;  %v4761_v35 = vrot.slane %v5501_v24, %v6101_v22 }
 0x4e1   :  { %v4130_v18 = vpop.f32.mrb[30].mxu0  ;;  %v4570_v41 = vrot.slane %v4562_v40, %v6101_v22  ;;  %v4577_v57 = vrot.slane %v4563_v25, %v6101_v22 }
 0x4e2   :  { %v4778_v53 = vcombine.low %v4713_v32, %v4729_v52  ;;  %v4810_v33 = vcombine.low %v4745_v4, %v4761_v35  ;;  %v4779_v8 = vcombine.high %v4713_v32, %v4729_v52  ;;  %v4811_v58 = vcombine.high %v4745_v4, %v4761_v35  ;;  %v5760_v21 = vpop.f32.mrb[31].mxu0 }
 0x4e3   :  { %v4578_v59 = vcombine.low %v3984_v44, %v4130_v18  ;;  %v4579_v51 = vcombine.high %v3984_v44, %v4130_v18 }
 0x4e4   :  { %v6961_v48 = vrot.slane %v4778_v53, %v6115_v27  ;;  %v6964_v14 = vrot.slane %v4810_v33, %v6115_v27  ;;  %v6967_v56 = vrot.slane %v4779_v8, %v6115_v27  ;;  %v6970_v50 = vrot.slane %v4811_v58, %v6115_v27 }
 0x4e5   :  { %v4586_v38 = vrot.slane %v4578_v59, %v6101_v22  ;;  %v4593_v19 = vrot.slane %v4579_v51, %v6101_v22 }
 0x4e6   :  { %v4831_v9 = vcombine.high %v6961_v48, %v6964_v14  ;;  %v4830_v3 = vcombine.low %v6961_v48, %v6964_v14  ;;  %v4833_v15 = vcombine.high %v6967_v56, %v6970_v50  ;;  %v4832_v16 = vcombine.low %v6967_v56, %v6970_v50 }
 0x4e7   :  { %v4626_v20 = vcombine.low %v4570_v41, %v4586_v38  ;;  %v4627_v7 = vcombine.high %v4570_v41, %v4586_v38  ;;  %v4642_v10 = vcombine.low %v4577_v57, %v4593_v19  ;;  %v4643_v0 = vcombine.high %v4577_v57, %v4593_v19 }
 0x4e9   :  { %v4634_v17 = vrot.slane %v4626_v20, %v6115_v27  ;;  %v4641_v12 = vrot.slane %v4627_v7, %v6115_v27  ;;  %v4650_v46 = vrot.slane %v4642_v10, %v6115_v27  ;;  %v4657_v63 = vrot.slane %v4643_v0, %v6115_v27 }
 0x4eb   :  { %v5502_v60 = vcombine.low %v4634_v17, %v4641_v12  ;;  %v5504_v23 = vcombine.high %v4634_v17, %v4641_v12  ;;  %v5506_v44 = vcombine.low %v4650_v46, %v4657_v63  ;;  %v5508_v55 = vcombine.high %v4650_v46, %v4657_v63 }
 0x4ed   :  { %v4842_v26 = vrot.slane %v5502_v60, %v6101_v22  ;;  %v4858_v47 = vrot.slane %v5504_v23, %v6101_v22  ;;  %v4874_v6 = vrot.slane %v5506_v44, %v6101_v22  ;;  %v4890_v28 = vrot.slane %v5508_v55, %v6101_v22  ;;  %v5876_v23 = vld [vmem:[%s7154_s2] sm:$0xff]  }
 0x4ee   :  { %5782 = vmatpush3.bf16.msra.mxu0 %v5876_v23 }
 0x4ef   :  { %v4899_v61 = vcombine.high %v4842_v26, %v4858_v47  ;;  %v4931_v5 = vcombine.high %v4874_v6, %v4890_v28  ;;  %v4898_v29 = vcombine.low %v4842_v26, %v4858_v47  ;;  %v4930_v54 = vcombine.low %v4874_v6, %v4890_v28  ;;  %5783 = vmatprep.subr.bf16.mxu0 %v5986_v1 }
 0x4f1   :  { %v4913_v39 = vrot.slane %v4899_v61, %v6115_v27  ;;  %v4945_v49 = vrot.slane %v4931_v5, %v6115_v27  ;;  %v6995_v62 = vrot.slane %v4898_v29, %v6115_v27  ;;  %v6998_v43 = vrot.slane %v4930_v54, %v6115_v27 }
 0x4f3   :  { %v4964_v31 = vcombine.low %v4913_v39, %v4945_v49  ;;  %v4963_v24 = vcombine.high %v6995_v62, %v6998_v43  ;;  %v4962_v37 = vcombine.low %v6995_v62, %v6998_v43  ;;  %v4965_v40 = vcombine.high %v4913_v39, %v4945_v49 }
 0x4f5   :  { %v5844_v25 = vpack.i.bf16 %v4964_v31, %v4828_v2  ;;  %v5839_v32 = vpack.i.bf16 %v4963_v24, %v4827_v11  ;;  %v5849_v52 = vpack.i.bf16 %v4965_v40, %v4829_v45  ;;  %v5877_v31 = vld [vmem:[%s7154_s2 + $0x8] sm:$0xff]   ;;  %s6002_s2 = smov 20  }
 0x4f6   :  { %5784 = vmatpush3.bf16.msra.mxu0 %v5877_v31 }
 0x4f7   :  { %5845 = vrot.lane.b32.xlu1 %v5844_v25, %s5999_s17  ;;  %5840 = vrot.lane.b32.xlu0 %v5839_v32, %s6000_s18  ;;  %v4203_v4 = vpop.f32.mrb[28].mxu1  ;;  %v4276_v35 = vpop.f32.mrb[32].mxu0 }
 0x4f8   :  { %v5765_v18 = vpop.f32.mrb[29].mxu1  ;;  %v5770_v53 = vpop.f32.mrb[33].mxu0  ;;  %5789 = vmatprep.subr.bf16.mxu0 %v5986_v1 }
 0x4fb   :  { %5850 = vrot.lane.b32.xlu0 %v5849_v52, %s6001_s19  ;;  %v4349_v2 = vpop.f32.mrb[30].mxu1  ;;  %v4422_v33 = vpop.f32.mrb[34].mxu0 }
 0x4fc   :  { %v4594_v8 = vcombine.low %v4203_v4, %v4349_v2  ;;  %v4595_v58 = vcombine.high %v4203_v4, %v4349_v2  ;;  %v4610_v11 = vcombine.low %v4276_v35, %v4422_v33  ;;  %v4611_v59 = vcombine.high %v4276_v35, %v4422_v33  ;;  %v5775_v51 = vpop.f32.mrb[31].mxu1  ;;  %v5780_v42 = vpop.f32.mrb[35].mxu0 }
 0x4fe   :  { %v4602_v36 = vrot.slane %v4594_v8, %v6101_v22  ;;  %v4609_v45 = vrot.slane %v4595_v58, %v6101_v22  ;;  %v4618_v21 = vrot.slane %v4610_v11, %v6101_v22  ;;  %v4625_v41 = vrot.slane %v4611_v59, %v6101_v22 }
 0x500   :  { %v4658_v57 = vcombine.low %v4602_v36, %v4618_v21  ;;  %v4659_v38 = vcombine.high %v4602_v36, %v4618_v21  ;;  %v4674_v19 = vcombine.low %v4609_v45, %v4625_v41  ;;  %v4675_v20 = vcombine.high %v4609_v45, %v4625_v41 }
 0x502   :  { %v4666_v7 = vrot.slane %v4658_v57, %v6115_v27  ;;  %v4673_v10 = vrot.slane %v4659_v38, %v6115_v27  ;;  %v4682_v0 = vrot.slane %v4674_v19, %v6115_v27  ;;  %v4689_v17 = vrot.slane %v4675_v20, %v6115_v27 }
 0x504   :  { %v5503_v12 = vcombine.low %v4666_v7, %v4673_v10  ;;  %v5505_v46 = vcombine.high %v4666_v7, %v4673_v10  ;;  %v5507_v63 = vcombine.low %v4682_v0, %v4689_v17  ;;  %v5509_v60 = vcombine.high %v4682_v0, %v4689_v17  ;;  %v5510_v17 = vld [vmem:[%s7155_s3] ss:$0 sm:$0xff] }
 0x506   :  { %v4849_v44 = vrot.slane %v5503_v12, %v6101_v22  ;;  %v4865_v55 = vrot.slane %v5505_v46, %v6101_v22  ;;  %v4881_v26 = vrot.slane %v5507_v63, %v6101_v22  ;;  %v4897_v47 = vrot.slane %v5509_v60, %v6101_v22 }
 0x508   :  { %v4914_v6 = vcombine.low %v4849_v44, %v4865_v55  ;;  %v4946_v28 = vcombine.low %v4881_v26, %v4897_v47  ;;  %v4915_v61 = vcombine.high %v4849_v44, %v4865_v55  ;;  %v4947_v5 = vcombine.high %v4881_v26, %v4897_v47  ;;  %v5960_v55 = vld [vmem:[%s7152_s0] sm:$0xff] }
 0x50a   :  { %v4922_v29 = vrot.slane %v4914_v6, %v6115_v27  ;;  %v4954_v54 = vrot.slane %v4946_v28, %v6115_v27  ;;  %v4929_v39 = vrot.slane %v4915_v61, %v6115_v27  ;;  %v4961_v49 = vrot.slane %v4947_v5, %v6115_v27  ;;  %v5961_v6 = vld [vmem:[%s7152_s0 + $0x8] sm:$0xff] }
 0x50c   :  { %v4967_v22 = vcombine.high %v4922_v29, %v4954_v54  ;;  %v4966_v24 = vcombine.low %v4922_v29, %v4954_v54  ;;  %v4969_v40 = vcombine.high %v4929_v39, %v4961_v49  ;;  %v4968_v25 = vcombine.low %v4929_v39, %v4961_v49 }
 0x50e   :  { %v5859_v32 = vpack.i.bf16 %v4967_v22, %v4831_v9  ;;  %v5854_v52 = vpack.i.bf16 %v4966_v24, %v4830_v3  ;;  %v5869_v27 = vpack.i.bf16 %v4969_v40, %v4833_v15  ;;  %v5864_v4 = vpack.i.bf16 %v4968_v25, %v4832_v16 }
 0x510   :  { %5860 = vrot.lane.b32.xlu0 %v5859_v32, %s6002_s2  ;;  %5855 = vrot.lane.b32.xlu1 %v5854_v52, %s6003_s24  ;;  %v5878_v32 = vld [vmem:[%s7156_s4] sm:$0xff]   ;;  %v5879_v52 = vld [vmem:[%s7156_s4 + $0x8] sm:$0xff]  }
 0x514   :  { %5870 = vrot.lane.b32.xlu0 %v5869_v27, %s6004_s25  ;;  %5865 = vrot.lane.b32.xlu1 %v5864_v4, %s6005_s26  ;;  %v5880_v27 = vld [vmem:[%s7158_s6] sm:$0xff]   ;;  %v5881_v4 = vld [vmem:[%s7158_s6 + $0x8] sm:$0xff]  }
 0x515   :  { %5798 = vmatpush3.bf16.msra.mxu1 %v5880_v27 }
 0x516   :  { %5799 = vmatprep.subr.bf16.mxu1 %v5986_v1 }
 0x519   :  { %5800 = vmatpush3.bf16.msra.mxu1 %v5881_v4 }
 0x51a   :  { %5801 = vmatprep.subr.bf16.mxu1 %v5986_v1 }
 0x569   :  { %v5841_v48 = vpop.permute.xlu0 %5840  ;;  %v5846_v14 = vpop.permute.xlu1 %5845 }
 0x56a   :  { %v5843_v9 = vunpack.i.h.bf16 %v5841_v48  ;;  %v5842_v3 = vunpack.i.l.bf16 %v5841_v48  ;;  %v5848_v15 = vunpack.i.h.bf16 %v5846_v14  ;;  %v5847_v18 = vunpack.i.l.bf16 %v5846_v14  ;;  %v5882_v48 = vld [vmem:[%s7158_s6 + $0x10] sm:$0xff]   ;;  %v5883_v14 = vld [vmem:[%s7158_s6 + $0x18] sm:$0xff]  }
 0x56b   :  { %5802 = vmatpush3.bf16.msra.mxu1 %v5882_v48  ;;  %v5530_v48 = vld [vmem:[%s7155_s3 + $0x5] ss:$0 sm:$0xff] }
 0x56c   :  { %v5026_v56 = vsel %vm1864_vm2, %v4826_v30, %v5842_v3  ;;  %v5027_v50 = vsel %vm1864_vm2, %v4962_v37, %v5843_v9  ;;  %5803 = vmatprep.subr.bf16.mxu1 %v5986_v1  ;;  %v5884_v9 = vld [vmem:[%s7158_s6 + $0x20] sm:$0xff]   ;;  %v5885_v3 = vld [vmem:[%s7158_s6 + $0x28] sm:$0xff]  }
 0x56d   :  { %v5851_v35 = vpop.permute.xlu0 %5850  ;;  %v5028_v8 = vsel %vm3081_vm3, %v5026_v56, %v5847_v18  ;;  %v5029_v58 = vsel %vm3081_vm3, %v5027_v50, %v5848_v15 }
 0x56e   :  { %v5853_v16 = vunpack.i.h.bf16 %v5851_v35  ;;  %v5852_v53 = vunpack.i.l.bf16 %v5851_v35 }
 0x56f   :  { %5804 = vmatpush3.bf16.msra.mxu1 %v5883_v14 }
 0x570   :  { %v5031_v13 = vsel %vm5030_vm4, %v5028_v8, %v5852_v53  ;;  %v5032_v34 = vsel %vm5030_vm4, %v5029_v58, %v5853_v16  ;;  %5805 = vmatprep.subr.bf16.mxu1 %v5986_v1 }
 0x573   :  { %5806 = vmatpush3.bf16.msra.mxu1 %v5884_v9 }
 0x574   :  { %5807 = vmatprep.subr.bf16.mxu1 %v5986_v1 }
 0x577   :  { %5808 = vmatpush3.bf16.msra.mxu1 %v5885_v3 }
 0x578   :  { %5809 = vmatprep.subr.bf16.mxu1 %v5986_v1 }
 0x582   :  { %v5861_v2 = vpop.permute.xlu0 %5860  ;;  %v5856_v33 = vpop.permute.xlu1 %5855 }
 0x583   :  { %v5858_v11 = vunpack.i.h.bf16 %v5856_v33  ;;  %v5857_v59 = vunpack.i.l.bf16 %v5856_v33  ;;  %v5863_v30 = vunpack.i.h.bf16 %v5861_v2  ;;  %v5862_v51 = vunpack.i.l.bf16 %v5861_v2  ;;  %v5514_v2 = vld [vmem:[%s7155_s3 + $0x1] ss:$0 sm:$0xff] }
 0x585   :  { %v5035_v42 = vsel %vm5033_vm5, %v5032_v34, %v5858_v11  ;;  %v5034_v62 = vsel %vm5033_vm5, %v5031_v13, %v5857_v59  ;;  %v5515_v59 = vld [vmem:[%s7155_s3 + $0x2] ss:$0 sm:$0xff] }
 0x586   :  { %v5871_v43 = vpop.permute.xlu0 %5870  ;;  %v5866_v37 = vpop.permute.xlu1 %5865  ;;  %v5037_v57 = vsel %vm5036_vm6, %v5034_v62, %v5862_v51  ;;  %v5038_v38 = vsel %vm5036_vm6, %v5035_v42, %v5863_v30  ;;  %v5886_v42 = vld [vmem:[%s7158_s6 + $0x30] sm:$0xff]   ;;  %v5887_v62 = vld [vmem:[%s7158_s6 + $0x38] sm:$0xff]  }
 0x587   :  { %v5873_v36 = vunpack.i.h.bf16 %v5871_v43  ;;  %v5872_v45 = vunpack.i.l.bf16 %v5871_v43  ;;  %v5868_v21 = vunpack.i.h.bf16 %v5866_v37  ;;  %v5867_v41 = vunpack.i.l.bf16 %v5866_v37  ;;  %5810 = vmatpush3.bf16.msra.mxu1 %v5886_v42  ;;  %v5516_v43 = vld [vmem:[%s7157_s5] ss:$0 sm:$0xff] }
 0x588   :  { %5811 = vmatprep.subr.bf16.mxu1 %v5986_v1 }
 0x589   :  { %v5040_v19 = vsel %vm5039_vm7, %v5037_v57, %v5867_v41  ;;  %v5041_v20 = vsel %vm5039_vm7, %v5038_v38, %v5868_v21 }
 0x58a   :  { %v5043_v7 = vsel %vm5042_vm8, %v5040_v19, %v5872_v45  ;;  %v5044_v10 = vsel %vm5042_vm8, %v5041_v20, %v5873_v36 }
 0x58b   :  { %v5045_v0 = vpack.c.bf16 %v5044_v10, %v5043_v7  ;;  %5812 = vmatpush3.bf16.msra.mxu1 %v5887_v62  ;;  %v5520_v7 = vld [vmem:[%s7155_s3 + $0x3] ss:$0 sm:$0xff] }
 0x58d   :  { %5786 = vmatmul.mubr.msk.bf16.vlgmr.msra.gmra.mrb[36].mxu0 %vm47_vm1, %v5045_v0 }
 0x58e   :  { %5793 = vmatprep.mubr.msk.bf16.mxu0 %vm5987_vm0, %v5986_v1  ;;  %5790 = vmatpush3.bf16.msra.mxu0 %v5878_v32 }
 0x58f   :  { %5791 = vmatprep.subr.bf16.mxu0 %v5986_v1 }
 0x592   :  { %5792 = vmatpush3.bf16.msra.mxu0 %v5879_v52  ;;  %v5529_v52 = vld [vmem:[%s7155_s3 + $0x4] ss:$0 sm:$0xff] }
 0x660   :  { %v5104_v12 = vpop.f32.mrb[36].mxu0 }
 0x661   :  { %v5105_v46 = vadd.f32 %v5510_v17, %v5104_v12  ;;  %v5787_v63 = vpop.f32.mrb[37].mxu0 }
 0x662   :  { %v5107_v60 = vpop.f32.mrb[38].mxu0 }
 0x663   :  { %v5108_v23 = vadd.f32 %v5510_v17, %v5107_v60  ;;  %v5788_v44 = vpop.f32.mrb[39].mxu0  ;;  %v5111_v26 = vadd.f32 %v5960_v55, %v5105_v46 }
 0x665   :  { %v5115_v47 = vsel %vm47_vm1, %v5111_v26, 0.0  ;;  %v5112_v28 = vadd.f32 %v5961_v6, %v5108_v23 }
 0x666   :  { %5116 = vadd.xlane.f32.xlu1 %v5115_v47 }
 0x667   :  { %v5118_v61 = vsel %vm47_vm1, %v5112_v28, 0.0 }
 0x668   :  { %5119 = vadd.xlane.f32.xlu0 %v5118_v61 }
 0x6f3   :  { %v5117_v5 = vpop.xlane.xlu1 %5116 }
 0x6f4   :  { %v5122_v29 = vmul.f32 0.03125, %v5117_v5 }
 0x6f5   :  { %v5120_v54 = vpop.xlane.xlu0 %5119 }
 0x6f6   :  { %v5124_v39 = vsub.f32 %v5111_v26, %v5122_v29  ;;  %v5123_v49 = vmul.f32 0.03125, %v5120_v54 }
 0x6f8   :  { %v5125_v31 = vsub.f32 %v5112_v28, %v5123_v49  ;;  %v5126_v22 = vmul.f32 %v5124_v39, %v5124_v39 }
 0x6fa   :  { %v5128_v24 = vsel %vm47_vm1, %v5126_v22, 0.0  ;;  %v5127_v40 = vmul.f32 %v5125_v31, %v5125_v31 }
 0x6fb   :  { %5129 = vadd.xlane.f32.xlu0 %v5128_v24 }
 0x6fc   :  { %v5131_v25 = vsel %vm47_vm1, %v5127_v40, 0.0 }
 0x6fd   :  { %5132 = vadd.xlane.f32.xlu1 %v5131_v25 }
 0x788   :  { %v5130_v35 = vpop.xlane.xlu0 %5129 }
 0x789   :  { %v5134_v15 = vmul.f32 0.03125, %v5130_v35 }
 0x78a   :  { %v5133_v18 = vpop.xlane.xlu1 %5132 }
 0x78b   :  { %v5136_v56 = vadd.f32 1e-05, %v5134_v15  ;;  %v5135_v50 = vmul.f32 0.03125, %v5133_v18 }
 0x78d   :  { %5952 = vrsqrt.f32 %v5136_v56  ;;  %v5137_v16 = vadd.f32 1e-05, %v5135_v50 }
 0x78f   :  { %5954 = vrsqrt.f32 %v5137_v16 }
 0x797   :  { %v5953_v53 = vpop.eup %5952 }
 0x798   :  { %v5140_v33 = vmul.f32 %v5953_v53, %v5124_v39 }
 0x799   :  { %v5955_v8 = vpop.eup %5954 }
 0x79a   :  { %v5146_v58 = vmul.f32 %v5514_v2, %v5140_v33  ;;  %v5141_v11 = vmul.f32 %v5955_v8, %v5125_v31 }
 0x79c   :  { %v5147_v13 = vmul.f32 %v5514_v2, %v5141_v11  ;;  %v5152_v34 = vadd.f32 %v5515_v59, %v5146_v58 }
 0x79e   :  { %v5153_v30 = vadd.f32 %v5515_v59, %v5147_v13 }
 0x7a0   :  { %v5154_v51 = vpack.c.bf16 %v5153_v30, %v5152_v34 }
 0x7a2   :  { %5794 = vmatmul.mubr.msk.bf16.vlgmr.msra.gmra.mrb[40].mxu0 %vm47_vm1, %v5154_v51 }
 0x875   :  { %v5215_v37 = vpop.f32.mrb[40].mxu0 }
 0x876   :  { %v5216_v36 = vadd.f32 %v5516_v43, %v5215_v37  ;;  %v5795_v45 = vpop.f32.mrb[41].mxu0 }
 0x877   :  { %v5218_v21 = vpop.f32.mrb[42].mxu0 }
 0x878   :  { %v5219_v41 = vadd.f32 %v5516_v43, %v5218_v21  ;;  %v5796_v57 = vpop.f32.mrb[43].mxu0  ;;  %v5222_v38 = vmax.f32 %v5216_v36, 0.0 }
 0x87a   :  { %v5223_v19 = vmax.f32 %v5219_v41, 0.0 }
 0x87c   :  { %v5224_v20 = vpack.c.bf16 %v5223_v19, %v5222_v38 }
 0x87e   :  { %5814 = vmatmul.mubr.bf16.vlgmr.msra.gmra.mrb[32].mxu1 %v5224_v20 }
 0x951   :  { %v5328_v1 = vpop.f32.mrb[32].mxu1 }
 0x952   :  { %v5329_v10 = vadd.f32 %v5520_v7, %v5328_v1  ;;  %v5815_v0 = vpop.f32.mrb[33].mxu1 }
 0x953   :  { %v5331_v17 = vpop.f32.mrb[34].mxu1 }
 0x954   :  { %v5332_v12 = vadd.f32 %v5520_v7, %v5331_v17  ;;  %v5816_v46 = vpop.f32.mrb[35].mxu1  ;;  %v5335_v63 = vadd.f32 %v5329_v10, %v5152_v34 }
 0x956   :  { %v5339_v60 = vsel %vm47_vm1, %v5335_v63, 0.0  ;;  %v5336_v23 = vadd.f32 %v5332_v12, %v5153_v30 }
 0x957   :  { %5340 = vadd.xlane.f32.xlu0 %v5339_v60 }
 0x958   :  { %v5342_v44 = vsel %vm47_vm1, %v5336_v23, 0.0 }
 0x959   :  { %5343 = vadd.xlane.f32.xlu1 %v5342_v44 }
 0x9e4   :  { %v5341_v55 = vpop.xlane.xlu0 %5340 }
 0x9e5   :  { %v5345_v26 = vmul.f32 0.03125, %v5341_v55 }
 0x9e6   :  { %v5344_v47 = vpop.xlane.xlu1 %5343 }
 0x9e7   :  { %v5347_v6 = vsub.f32 %v5335_v63, %v5345_v26  ;;  %v5346_v28 = vmul.f32 0.03125, %v5344_v47 }
 0x9e9   :  { %v5348_v61 = vsub.f32 %v5336_v23, %v5346_v28  ;;  %v5349_v5 = vmul.f32 %v5347_v6, %v5347_v6 }
 0x9eb   :  { %v5351_v29 = vsel %vm47_vm1, %v5349_v5, 0.0  ;;  %v5350_v54 = vmul.f32 %v5348_v61, %v5348_v61 }
 0x9ec   :  { %5352 = vadd.xlane.f32.xlu0 %v5351_v29 }
 0x9ed   :  { %v5354_v39 = vsel %vm47_vm1, %v5350_v54, 0.0 }
 0x9ee   :  { %5355 = vadd.xlane.f32.xlu1 %v5354_v39 }
 0xa79   :  { %v5353_v49 = vpop.xlane.xlu0 %5352 }
 0xa7a   :  { %v5357_v31 = vmul.f32 0.03125, %v5353_v49 }
 0xa7b   :  { %v5356_v22 = vpop.xlane.xlu1 %5355 }
 0xa7c   :  { %v5359_v24 = vadd.f32 1e-05, %v5357_v31  ;;  %v5358_v40 = vmul.f32 0.03125, %v5356_v22 }
 0xa7e   :  { %5956 = vrsqrt.f32 %v5359_v24  ;;  %v5360_v25 = vadd.f32 1e-05, %v5358_v40 }
 0xa80   :  { %5958 = vrsqrt.f32 %v5360_v25 }
 0xa88   :  { %v5957_v32 = vpop.eup %5956 }
 0xa89   :  { %v5363_v27 = vmul.f32 %v5957_v32, %v5347_v6 }
 0xa8a   :  { %v5959_v4 = vpop.eup %5958 }
 0xa8b   :  { %v5364_v14 = vmul.f32 %v5959_v4, %v5348_v61  ;;  %v5369_v9 = vmul.f32 %v5529_v52, %v5363_v27 }
 0xa8d   :  { %v5370_v3 = vmul.f32 %v5529_v52, %v5364_v14  ;;  %v5375_v35 = vadd.f32 %v5530_v48, %v5369_v9 }
 0xa8f   :  { %v5376_v15 = vadd.f32 %v5530_v48, %v5370_v3  ;;  %5377 = vst.msk [vmem:[#allocation2] sm:$0xff] %vm47_vm1, %v5375_v35 }
 0xa91   :  { %5378 = vst.msk [vmem:[#allocation2 + $0x8] sm:$0xff] %vm47_vm1, %v5376_v15 }
 0xa92   :  { %5973 = shalt.err (!%p5970_p4)
}
 0xa93   :  { %s5974_s16 = scalar_lea.hbm %s7159_s7, 256 }
 0xa94   :  { %p5975_p5 = scmp.ne.s32.totalorder %s7159_s7, %s5974_s16  ;;  %p5978_p6 = scmp.lt.u32.totalorder %s5974_s16, %s7159_s7 }
 0xa96   :  { %p5980_p7 = pnand %p5978_p6, %p5975_p5 }
 0xa98   :  { %5983 = shalt.err (!%p5980_p7)
}
 0xa99   :  { %s6007_s21 = smov 128  }
 0xa9a   :  { %5390 = dma.vmem_to_hbm [thread:$0]  %s5385_s13, 256, %s7159_s7, [#allocation3], %s6007_s21, %s6007_s21, %s5999_s17  }
 0xa9b   :  { %5984 = dma.done.wait [#allocation3], 256  }
 0xa9c   :  { %5985 = vsyncadd [#allocation3], 4294967040 }
 0xa9d   :  { %5394 = vsyncpa [#allocation3], 1 }

</bundles_post_ra>
